<compile_context>
chip_gen: v7x
topology: tpu7x:2x2x1
jax: 0.10.0
libtpu: 0.0.40
codegen_flags: <defaults>
</compile_context>

<pallas_src>
import math

import jax
import jax.numpy as jnp
import numpy as np
from jax.experimental import pallas as pl
from jax.experimental.pallas import tpu as pltpu


# --------------------------------------------------------------------------
# numpy constant builders (computed once at init; all tiny at these shapes)
# --------------------------------------------------------------------------

def _make_conv_masks(H, W):
    """(9, H*W) 0/1 masks: tap (dy,dx) valid iff the shifted pixel stays inside the image."""
    m = np.zeros((9, H * W), np.float32)
    t = 0
    for dy in (-1, 0, 1):
        for dx in (-1, 0, 1):
            for y in range(H):
                for x in range(W):
                    if 0 <= y + dy < H and 0 <= x + dx < W:
                        m[t, y * W + x] = 1.0
            t += 1
    return m


def _make_pool_select(H, W):
    """(H*W, (H//2)*(W//2)) 0/1 matrix selecting the 2x2 window anchors (exact subsample)."""
    Ho, Wo = H // 2, W // 2
    s = np.zeros((H * W, Ho * Wo), np.float32)
    for yo in range(Ho):
        for xo in range(Wo):
            s[(2 * yo) * W + 2 * xo, yo * Wo + xo] = 1.0
    return s


def _make_up_scatter(Hlo, Wlo, k):
    """(k*k*Hlo*Wlo, (k*Hlo)*(k*Wlo)) 0/1 scatter doing the pixel shuffle of ConvTranspose(k,k)."""
    Hhi, Whi = Hlo * k, Wlo * k
    s = np.zeros((k * k * Hlo * Wlo, Hhi * Whi), np.float32)
    for p in range(k):
        for q in range(k):
            t = p * k + q
            for yo in range(Hlo):
                for xo in range(Wlo):
                    jlo = yo * Wlo + xo
                    jhi = (yo * k + p) * Whi + (xo * k + q)
                    s[t * Hlo * Wlo + jlo, jhi] = 1.0
    return s


# --------------------------------------------------------------------------
# fused kernel (one grid step == one batch element, all levels)
# --------------------------------------------------------------------------

def _build_fpm_kernel(n_levels, enc, in_channels, dims):
    """Builds the fused whole-forward kernel body for a static configuration."""

    def conv3x3(diff, mask9, w_mat, b_col, W):
        # diff: (Cin, H*W) channels-first flattened image (lane-dense); mask9: (9, H*W)
        Cc, L = diff.shape
        P = W + 1
        z = jnp.zeros((Cc, P), jnp.float32)
        dp = jnp.concatenate([z, diff, z], axis=1)           # zero halo, VMEM only
        taps = []
        t = 0
        for dy in (-1, 0, 1):
            for dx in (-1, 0, 1):
                s = P + dy * W + dx
                taps.append(dp[:, s:s + L] * mask9[t:t + 1, :])
                t += 1
        patches = jnp.concatenate(taps, axis=0)              # (9*Cin, H*W) im2col
        return jnp.dot(w_mat, patches,
                       preferred_element_type=jnp.float32) + b_col

    def pool2(feat, spool, W):
        # 2x2 / stride-2 max pool: max of 4 lane-shifted copies + exact 0/1 subsample matmul
        c, L = feat.shape
        z = jnp.zeros((c, W + 1), jnp.float32)
        fp = jnp.concatenate([feat, z], axis=1)
        m = jnp.maximum(jnp.maximum(fp[:, 0:L], fp[:, 1:L + 1]),
                        jnp.maximum(fp[:, W:W + L], fp[:, W + 1:W + 1 + L]))
        return jnp.dot(m, spool, preferred_element_type=jnp.float32)

    def conv_t(feat, wcat, b_col, sup, k):
        # ConvTranspose2d(enc, enc, k, stride=k): channel mix + fused pixel-shuffle scatter
        y = jnp.dot(wcat, feat, preferred_element_type=jnp.float32)   # (k*k*enc, L_lo)
        z = jnp.concatenate([y[t * enc:(t + 1) * enc, :] for t in range(k * k)],
                            axis=1)                                   # (enc, k*k*L_lo)
        return jnp.dot(z, sup, preferred_element_type=jnp.float32) + b_col

    def agg(feats, wagg, b_col):
        x = jnp.concatenate(feats, axis=0)                            # channel concat in VMEM
        return jnp.dot(wagg, x, preferred_element_type=jnp.float32) + b_col

    W0 = dims[0][1]

    if n_levels == 3:
        W1 = dims[1][1]

        def kernel(r0, t0, r1, t1, r2, t2, m0, m1, m2,
                   wenc, benc, wct10, bct10, wct21, bct21, wct20, bct20,
                   sup10, sup21, sup20, sp01, sp12,
                   wa0, wa1, wa2, ba0, ba1, ba2,
                   o0, o1, o2):
            # hoist all constant loads once per grid step
            wenc_v, benc_v = wenc[...], benc[...]
            masks = (m0[...], m1[...], m2[...])
            mo = []
            for lvl, (rr, tt) in enumerate(((r0, t0), (r1, t1), (r2, t2))):
                diff = rr[...] - tt[...]                     # fused ref - target subtraction
                mo.append(conv3x3(diff, masks[lvl], wenc_v, benc_v, dims[lvl][1]))
            up2_m1 = conv_t(mo[1], wct10[...], bct10[...], sup10[...], 2)
            up2_m2 = conv_t(mo[2], wct21[...], bct21[...], sup21[...], 2)
            up4_m2 = conv_t(mo[2], wct20[...], bct20[...], sup20[...], 4)
            dn2_m0 = pool2(mo[0], sp01[...], W0)
            dn4_m0 = pool2(dn2_m0, sp12[...], W1)            # MaxPool(4) == MaxPool(2) o MaxPool(2)
            dn2_m1 = pool2(mo[1], sp12[...], W1)
            o0[...] = agg((mo[0], up2_m1, up4_m2), wa0[...], ba0[...])
            o1[...] = agg((dn2_m0, mo[1], up2_m2), wa1[...], ba1[...])
            o2[...] = agg((dn4_m0, dn2_m1, mo[2]), wa2[...], ba2[...])

        return kernel

    def kernel(r0, t0, r1, t1, m0, m1,
               wenc, benc, wct10, bct10, sup10, sp01,
               wa0, wa1, ba0, ba1, o0, o1):
        wenc_v, benc_v = wenc[...], benc[...]
        masks = (m0[...], m1[...])
        mo = []
        for lvl, (rr, tt) in enumerate(((r0, t0), (r1, t1))):
            diff = rr[...] - tt[...]
            mo.append(conv3x3(diff, masks[lvl], wenc_v, benc_v, dims[lvl][1]))
        up2_m1 = conv_t(mo[1], wct10[...], bct10[...], sup10[...], 2)
        dn2_m0 = pool2(mo[0], sp01[...], W0)
        o0[...] = agg((mo[0], up2_m1), wa0[...], ba0[...])
        o1[...] = agg((dn2_m0, mo[1]), wa1[...], ba1[...])

    return kernel


# --------------------------------------------------------------------------
# Parameter init (deterministic, synthetic) + module wrapper
# --------------------------------------------------------------------------

def xavier_uniform(key, shape, fan_in, fan_out):
    bound = math.sqrt(6.0 / (fan_in + fan_out))
    return jax.random.uniform(key, shape, jnp.float32, -bound, bound)


def uniform_init(key, shape, bound):
    return jax.random.uniform(key, shape, jnp.float32, -bound, bound)


class FPMNetPallas:
    def __init__(self, in_channels, num_levels, scale_list, key):
        assert num_levels in (2, 3)
        self.n_levels = num_levels
        self.in_channels = in_channels
        self.scale_list = [tuple(s) for s in scale_list]
        enc = in_channels // num_levels
        self.enc = enc
        ks = jax.random.split(key, 16)

        # motion_encoder: Conv2d(Cin, enc, 3, pad=1), xavier weight, zero bias (canonical HWIO)
        self.w_enc = xavier_uniform(ks[0], (3, 3, in_channels, enc),
                                    in_channels * 9, enc * 9)
        self.b_enc = jnp.zeros((enc,), jnp.float32)
        # kernel layout: (enc, 9*Cin), row-major over (ky, kx, ci) -- matches im2col tap order
        self.w_enc_mat = jnp.transpose(self.w_enc, (3, 0, 1, 2)).reshape(enc, 9 * in_channels)
        self.b_enc_col = self.b_enc.reshape(enc, 1)

        # ConvTranspose2d weights, canonical layout (Cin, kH, kW, Cout)
        def ct_params(kw, kb, ksize):
            bound = 1.0 / math.sqrt(enc * ksize * ksize)
            return (uniform_init(kw, (enc, ksize, ksize, enc), bound),
                    uniform_init(kb, (enc,), bound))

        def ct_kernel_layout(w_t, ksize):
            # (k*k*Cout, Cin): row (p*k+q)*Cout + co  == w_t[ci, p, q, co]
            return jnp.transpose(w_t, (1, 2, 3, 0)).reshape(ksize * ksize * enc, enc)

        self.w_b2inc2, self.b_b2inc2 = ct_params(ks[1], ks[2], 2)
        self.wcat_b2inc2 = ct_kernel_layout(self.w_b2inc2, 2)
        self.bcol_b2inc2 = self.b_b2inc2.reshape(enc, 1)
        if num_levels == 3:
            self.w_b3inc2, self.b_b3inc2 = ct_params(ks[3], ks[4], 2)
            self.wcat_b3inc2 = ct_kernel_layout(self.w_b3inc2, 2)
            self.bcol_b3inc2 = self.b_b3inc2.reshape(enc, 1)
            self.w_b3inc4, self.b_b3inc4 = ct_params(ks[5], ks[6], 4)
            self.wcat_b3inc4 = ct_kernel_layout(self.w_b3inc4, 4)
            self.bcol_b3inc4 = self.b_b3inc4.reshape(enc, 1)

        # ms_motion_agg: n_levels x Conv2d(enc*n, Cin, 1), xavier weight, zero bias
        self.w_agg, self.b_agg, self.wagg_k, self.bagg_col = [], [], [], []
        for lvl in range(num_levels):
            w = xavier_uniform(ks[7 + lvl], (enc * num_levels, in_channels),
                               enc * num_levels, in_channels)
            self.w_agg.append(w)
            self.b_agg.append(jnp.zeros((in_channels,), jnp.float32))
            self.wagg_k.append(w.T)                                   # (Cin, n*enc)
            self.bagg_col.append(jnp.zeros((in_channels, 1), jnp.float32))

        # static 0/1 structure matrices (conv boundary masks, pool subsample, convT scatter)
        self.masks = [jnp.asarray(_make_conv_masks(H, W)) for (H, W) in self.scale_list]
        self.spool01 = jnp.asarray(_make_pool_select(*self.scale_list[0]))
        self.sup10 = jnp.asarray(_make_up_scatter(*self.scale_list[1], k=2))
        if num_levels == 3:
            self.spool12 = jnp.asarray(_make_pool_select(*self.scale_list[1]))
            self.sup21 = jnp.asarray(_make_up_scatter(*self.scale_list[2], k=2))
            self.sup20 = jnp.asarray(_make_up_scatter(*self.scale_list[2], k=4))

    def _to_2d(self, seq, lvl):
        # NHWC view of the sequence input -- used only by the pure-JAX reference
        H, W = self.scale_list[lvl]
        B = seq.shape[0]
        return seq.reshape(B, H, W, self.in_channels)

    def __call__(self, ref_dict, tgt_dict):
        n = self.n_levels
        C = self.in_channels
        # == the module's own torch.transpose(1,2): (B, H*W, C) -> (B, C, H*W)
        refs_cf = [jnp.transpose(ref_dict[f'spatialAttn_result_{2 ** (l + 1)}x'], (0, 2, 1))
                   for l in range(n)]
        tgts_cf = [jnp.transpose(tgt_dict[f'temporalAttn_result_{2 ** (l + 1)}x'], (0, 2, 1))
                   for l in range(n)]
        B = refs_cf[0].shape[0]

        kernel = _build_fpm_kernel(n, self.enc, C, tuple(self.scale_list))

        def seq_spec(H, W):
            # one batch element per grid step; batch dim squeezed out of the kernel view
            return pl.BlockSpec((None, C, H * W), lambda b: (b, 0, 0))

        def const_spec(arr):
            # weights / structure matrices: constant block index -> DMA'd once, VMEM-resident
            zero_idx = (0,) * arr.ndim
            return pl.BlockSpec(arr.shape, lambda b, _z=zero_idx: _z)

        if n == 3:
            pairs = [
                (refs_cf[0], seq_spec(*self.scale_list[0])),
                (tgts_cf[0], seq_spec(*self.scale_list[0])),
                (refs_cf[1], seq_spec(*self.scale_list[1])),
                (tgts_cf[1], seq_spec(*self.scale_list[1])),
                (refs_cf[2], seq_spec(*self.scale_list[2])),
                (tgts_cf[2], seq_spec(*self.scale_list[2])),
            ]
            consts = [self.masks[0], self.masks[1], self.masks[2],
                      self.w_enc_mat, self.b_enc_col,
                      self.wcat_b2inc2, self.bcol_b2inc2,
                      self.wcat_b3inc2, self.bcol_b3inc2,
                      self.wcat_b3inc4, self.bcol_b3inc4,
                      self.sup10, self.sup21, self.sup20,
                      self.spool01, self.spool12,
                      self.wagg_k[0], self.wagg_k[1], self.wagg_k[2],
                      self.bagg_col[0], self.bagg_col[1], self.bagg_col[2]]
        else:
            pairs = [
                (refs_cf[0], seq_spec(*self.scale_list[0])),
                (tgts_cf[0], seq_spec(*self.scale_list[0])),
                (refs_cf[1], seq_spec(*self.scale_list[1])),
                (tgts_cf[1], seq_spec(*self.scale_list[1])),
            ]
            consts = [self.masks[0], self.masks[1],
                      self.w_enc_mat, self.b_enc_col,
                      self.wcat_b2inc2, self.bcol_b2inc2,
                      self.sup10, self.spool01,
                      self.wagg_k[0], self.wagg_k[1],
                      self.bagg_col[0], self.bagg_col[1]]

        pairs += [(c, const_spec(c)) for c in consts]
        args = [p[0] for p in pairs]
        in_specs = [p[1] for p in pairs]

        out_shape = tuple(jax.ShapeDtypeStruct((B, C, H * W), jnp.float32)
                          for (H, W) in self.scale_list)
        out_specs = tuple(pl.BlockSpec((None, C, H * W), lambda b: (b, 0, 0))
                          for (H, W) in self.scale_list)

        outs = pl.pallas_call(
            kernel,
            out_shape=out_shape,
            grid_spec=pltpu.PrefetchScalarGridSpec(
                num_scalar_prefetch=0,
                grid=(B,),
                in_specs=in_specs,
                out_specs=out_specs),
            compiler_params=pltpu.CompilerParams(
                dimension_semantics=("parallel",)),
        )(*args)

        # (B, C, H*W) -> (B, C, H, W): free, metadata-only reshape (NCHW, as PyTorch returns)
        return [o.reshape(B, C, H, W) for o, (H, W) in zip(outs, self.scale_list)]


# --------------------------------------------------------------------------
# Pure-JAX reference (independent of the Pallas kernel) for validation
# --------------------------------------------------------------------------

def _ref_conv3x3(x, w, b):
    y = jax.lax.conv_general_dilated(
        x, w, window_strides=(1, 1), padding='SAME',
        dimension_numbers=('NHWC', 'HWIO', 'NHWC'))
    return y + b


def _ref_maxpool(x, k):
    return jax.lax.reduce_window(x, -jnp.inf, jax.lax.max,
                                 (1, k, k, 1), (1, k, k, 1), 'VALID')


def _ref_convt(x, w_t, b, k):
    B, H, W, Cin = x.shape
    Cout = w_t.shape[-1]
    t = jnp.einsum('bhwi,ipqo->bhpwqo', x, w_t)
    return t.reshape(B, H * k, W * k, Cout) + b


def _ref_agg(xs, w, b):
    x = jnp.concatenate(xs, axis=-1)
    return jnp.einsum('bhwi,io->bhwo', x, w) + b


def reference_forward(net, ref_dict, tgt_dict):
    n = net.n_levels
    ref2d = [net._to_2d(ref_dict[f'spatialAttn_result_{2 ** (l + 1)}x'], l) for l in range(n)]
    tgt2d = [net._to_2d(tgt_dict[f'temporalAttn_result_{2 ** (l + 1)}x'], l) for l in range(n)]
    motion = [_ref_conv3x3(ref2d[l] - tgt2d[l], net.w_enc, net.b_enc) for l in range(n)]
    fused = []
    if n == 3:
        up2_m1 = _ref_convt(motion[1], net.w_b2inc2, net.b_b2inc2, 2)
        up4_m2 = _ref_convt(motion[2], net.w_b3inc4, net.b_b3inc4, 4)
        up2_m2 = _ref_convt(motion[2], net.w_b3inc2, net.b_b3inc2, 2)
        dn2_m0 = _ref_maxpool(motion[0], 2)
        dn4_m0 = _ref_maxpool(motion[0], 4)
        dn2_m1 = _ref_maxpool(motion[1], 2)
        fused.append(_ref_agg([motion[0], up2_m1, up4_m2], net.w_agg[0], net.b_agg[0]))
        fused.append(_ref_agg([dn2_m0, motion[1], up2_m2], net.w_agg[1], net.b_agg[1]))
        fused.append(_ref_agg([dn4_m0, dn2_m1, motion[2]], net.w_agg[2], net.b_agg[2]))
    else:
        up2_m1 = _ref_convt(motion[1], net.w_b2inc2, net.b_b2inc2, 2)
        dn2_m0 = _ref_maxpool(motion[0], 2)
        fused.append(_ref_agg([motion[0], up2_m1], net.w_agg[0], net.b_agg[0]))
        fused.append(_ref_agg([dn2_m0, motion[1]], net.w_agg[1], net.b_agg[1]))
    return [f.transpose(0, 3, 1, 2) for f in fused]


# --------------------------------------------------------------------------

if __name__ == "__main__":
    key = jax.random.PRNGKey(0)
    B = 2
    in_channels = 6           # divisible by n_levels -> encode_channel = 2
    n_levels = 3
    scale_list = [(16, 16), (8, 8), (4, 4)]

    k_params, k_in = jax.random.split(key)
    net = FPMNetPallas(in_channels, n_levels, scale_list, k_params)

    ks = jax.random.split(k_in, 2 * n_levels)
    ref_dict, tgt_dict = {}, {}
    for lvl, (H, W) in enumerate(scale_list):
        sc = 2 ** (lvl + 1)
        ref_dict[f'spatialAttn_result_{sc}x'] = jax.random.normal(
            ks[2 * lvl], (B, H * W, in_channels), jnp.float32)
        tgt_dict[f'temporalAttn_result_{sc}x'] = jax.random.normal(
            ks[2 * lvl + 1], (B, H * W, in_channels), jnp.float32)

    outs = net(ref_dict, tgt_dict)
    outs = jax.block_until_ready(outs)

    ref_outs = reference_forward(net, ref_dict, tgt_dict)
    for o, ro in zip(outs, ref_outs):
        np.testing.assert_allclose(np.asarray(o), np.asarray(ro), rtol=1e-4, atol=1e-4)

    print("KERNEL_OK")
</pallas_src>

<mosaic_0001>
module attributes {stable_mosaic.version = 11 : i64} {
  func.func @kernel(%arg0: i32, %arg1: memref<1x6x256xf32, #tpu.memory_space<vmem>>, %arg2: memref<1x6x256xf32, #tpu.memory_space<vmem>>, %arg3: memref<1x6x64xf32, #tpu.memory_space<vmem>>, %arg4: memref<1x6x64xf32, #tpu.memory_space<vmem>>, %arg5: memref<1x6x16xf32, #tpu.memory_space<vmem>>, %arg6: memref<1x6x16xf32, #tpu.memory_space<vmem>>, %arg7: memref<9x256xf32, #tpu.memory_space<vmem>>, %arg8: memref<9x64xf32, #tpu.memory_space<vmem>>, %arg9: memref<9x16xf32, #tpu.memory_space<vmem>>, %arg10: memref<2x54xf32, #tpu.memory_space<vmem>>, %arg11: memref<2x1xf32, #tpu.memory_space<vmem>>, %arg12: memref<8x2xf32, #tpu.memory_space<vmem>>, %arg13: memref<2x1xf32, #tpu.memory_space<vmem>>, %arg14: memref<8x2xf32, #tpu.memory_space<vmem>>, %arg15: memref<2x1xf32, #tpu.memory_space<vmem>>, %arg16: memref<32x2xf32, #tpu.memory_space<vmem>>, %arg17: memref<2x1xf32, #tpu.memory_space<vmem>>, %arg18: memref<256x256xf32, #tpu.memory_space<vmem>>, %arg19: memref<64x64xf32, #tpu.memory_space<vmem>>, %arg20: memref<256x256xf32, #tpu.memory_space<vmem>>, %arg21: memref<256x64xf32, #tpu.memory_space<vmem>>, %arg22: memref<64x16xf32, #tpu.memory_space<vmem>>, %arg23: memref<6x6xf32, #tpu.memory_space<vmem>>, %arg24: memref<6x6xf32, #tpu.memory_space<vmem>>, %arg25: memref<6x6xf32, #tpu.memory_space<vmem>>, %arg26: memref<6x1xf32, #tpu.memory_space<vmem>>, %arg27: memref<6x1xf32, #tpu.memory_space<vmem>>, %arg28: memref<6x1xf32, #tpu.memory_space<vmem>>, %arg29: memref<1x6x256xf32, #tpu.memory_space<vmem>>, %arg30: memref<1x6x64xf32, #tpu.memory_space<vmem>>, %arg31: memref<1x6x16xf32, #tpu.memory_space<vmem>>) attributes {dimension_semantics = [#tpu.dimension_semantics<parallel>], iteration_bounds = array<i64: 2>, scalar_prefetch = 0 : i64, scratch_operands = 0 : i64, tpu.core_type = #tpu.core_type<tc>, window_params = [{transform_indices = @transform_0, window_bounds = array<i64: 1, 6, 256>}, {transform_indices = @transform_1, window_bounds = array<i64: 1, 6, 256>}, {transform_indices = @transform_2, window_bounds = array<i64: 1, 6, 64>}, {transform_indices = @transform_3, window_bounds = array<i64: 1, 6, 64>}, {transform_indices = @transform_4, window_bounds = array<i64: 1, 6, 16>}, {transform_indices = @transform_5, window_bounds = array<i64: 1, 6, 16>}, {pipeline_mode = #tpu.pipeline_mode<synchronous>, transform_indices = @transform_6, window_bounds = array<i64: 9, 256>}, {pipeline_mode = #tpu.pipeline_mode<synchronous>, transform_indices = @transform_7, window_bounds = array<i64: 9, 64>}, {pipeline_mode = #tpu.pipeline_mode<synchronous>, transform_indices = @transform_8, window_bounds = array<i64: 9, 16>}, {pipeline_mode = #tpu.pipeline_mode<synchronous>, transform_indices = @transform_9, window_bounds = array<i64: 2, 54>}, {pipeline_mode = #tpu.pipeline_mode<synchronous>, transform_indices = @transform_10, window_bounds = array<i64: 2, 1>}, {pipeline_mode = #tpu.pipeline_mode<synchronous>, transform_indices = @transform_11, window_bounds = array<i64: 8, 2>}, {pipeline_mode = #tpu.pipeline_mode<synchronous>, transform_indices = @transform_12, window_bounds = array<i64: 2, 1>}, {pipeline_mode = #tpu.pipeline_mode<synchronous>, transform_indices = @transform_13, window_bounds = array<i64: 8, 2>}, {pipeline_mode = #tpu.pipeline_mode<synchronous>, transform_indices = @transform_14, window_bounds = array<i64: 2, 1>}, {pipeline_mode = #tpu.pipeline_mode<synchronous>, transform_indices = @transform_15, window_bounds = array<i64: 32, 2>}, {pipeline_mode = #tpu.pipeline_mode<synchronous>, transform_indices = @transform_16, window_bounds = array<i64: 2, 1>}, {pipeline_mode = #tpu.pipeline_mode<synchronous>, transform_indices = @transform_17, window_bounds = array<i64: 256, 256>}, {pipeline_mode = #tpu.pipeline_mode<synchronous>, transform_indices = @transform_18, window_bounds = array<i64: 64, 64>}, {pipeline_mode = #tpu.pipeline_mode<synchronous>, transform_indices = @transform_19, window_bounds = array<i64: 256, 256>}, {pipeline_mode = #tpu.pipeline_mode<synchronous>, transform_indices = @transform_20, window_bounds = array<i64: 256, 64>}, {pipeline_mode = #tpu.pipeline_mode<synchronous>, transform_indices = @transform_21, window_bounds = array<i64: 64, 16>}, {pipeline_mode = #tpu.pipeline_mode<synchronous>, transform_indices = @transform_22, window_bounds = array<i64: 6, 6>}, {pipeline_mode = #tpu.pipeline_mode<synchronous>, transform_indices = @transform_23, window_bounds = array<i64: 6, 6>}, {pipeline_mode = #tpu.pipeline_mode<synchronous>, transform_indices = @transform_24, window_bounds = array<i64: 6, 6>}, {pipeline_mode = #tpu.pipeline_mode<synchronous>, transform_indices = @transform_25, window_bounds = array<i64: 6, 1>}, {pipeline_mode = #tpu.pipeline_mode<synchronous>, transform_indices = @transform_26, window_bounds = array<i64: 6, 1>}, {pipeline_mode = #tpu.pipeline_mode<synchronous>, transform_indices = @transform_27, window_bounds = array<i64: 6, 1>}, {transform_indices = @transform_28, window_bounds = array<i64: 1, 6, 256>}, {transform_indices = @transform_29, window_bounds = array<i64: 1, 6, 64>}, {transform_indices = @transform_30, window_bounds = array<i64: 1, 6, 16>}]} {
    %c0 = arith.constant 0 : index
    %c0_0 = arith.constant 0 : index
    %0 = vector.load %arg10[%c0, %c0_0] : memref<2x54xf32, #tpu.memory_space<vmem>>, vector<2x54xf32>
    %c0_1 = arith.constant 0 : index
    %c0_2 = arith.constant 0 : index
    %1 = vector.load %arg11[%c0_1, %c0_2] : memref<2x1xf32, #tpu.memory_space<vmem>>, vector<2x1xf32>
    %c0_3 = arith.constant 0 : index
    %c0_4 = arith.constant 0 : index
    %2 = vector.load %arg7[%c0_3, %c0_4] : memref<9x256xf32, #tpu.memory_space<vmem>>, vector<9x256xf32>
    %c0_5 = arith.constant 0 : index
    %c0_6 = arith.constant 0 : index
    %3 = vector.load %arg8[%c0_5, %c0_6] : memref<9x64xf32, #tpu.memory_space<vmem>>, vector<9x64xf32>
    %c0_7 = arith.constant 0 : index
    %c0_8 = arith.constant 0 : index
    %4 = vector.load %arg9[%c0_7, %c0_8] : memref<9x16xf32, #tpu.memory_space<vmem>>, vector<9x16xf32>
    %c0_9 = arith.constant 0 : index
    %c0_10 = arith.constant 0 : index
    %c0_11 = arith.constant 0 : index
    %5 = vector.load %arg1[%c0_9, %c0_10, %c0_11] : memref<1x6x256xf32, #tpu.memory_space<vmem>>, vector<1x6x256xf32>
    %6 = vector.shape_cast %5 : vector<1x6x256xf32> to vector<6x256xf32>
    %c0_12 = arith.constant 0 : index
    %c0_13 = arith.constant 0 : index
    %c0_14 = arith.constant 0 : index
    %7 = vector.load %arg2[%c0_12, %c0_13, %c0_14] : memref<1x6x256xf32, #tpu.memory_space<vmem>>, vector<1x6x256xf32>
    %8 = vector.shape_cast %7 : vector<1x6x256xf32> to vector<6x256xf32>
    %9 = arith.subf %6, %8 : vector<6x256xf32>
    %cst = arith.constant 0.000000e+00 : f32
    %10 = vector.broadcast %cst : f32 to vector<6x17xf32>
    %11 = tpu.concatenate %10, %9, %10 in 1 : vector<6x17xf32>, vector<6x256xf32>, vector<6x17xf32> -> vector<6x290xf32>
    %12 = vector.extract_strided_slice %11 {offsets = [0, 0], sizes = [6, 256], strides = [1, 1]} : vector<6x290xf32> to vector<6x256xf32>
    %13 = vector.extract_strided_slice %2 {offsets = [0, 0], sizes = [1, 256], strides = [1, 1]} : vector<9x256xf32> to vector<1x256xf32>
    %14 = vector.broadcast %13 : vector<1x256xf32> to vector<6x256xf32>
    %15 = arith.mulf %12, %14 : vector<6x256xf32>
    %16 = vector.extract_strided_slice %11 {offsets = [0, 1], sizes = [6, 256], strides = [1, 1]} : vector<6x290xf32> to vector<6x256xf32>
    %17 = vector.extract_strided_slice %2 {offsets = [1, 0], sizes = [1, 256], strides = [1, 1]} : vector<9x256xf32> to vector<1x256xf32>
    %18 = vector.broadcast %17 : vector<1x256xf32> to vector<6x256xf32>
    %19 = arith.mulf %16, %18 : vector<6x256xf32>
    %20 = vector.extract_strided_slice %11 {offsets = [0, 2], sizes = [6, 256], strides = [1, 1]} : vector<6x290xf32> to vector<6x256xf32>
    %21 = vector.extract_strided_slice %2 {offsets = [2, 0], sizes = [1, 256], strides = [1, 1]} : vector<9x256xf32> to vector<1x256xf32>
    %22 = vector.broadcast %21 : vector<1x256xf32> to vector<6x256xf32>
    %23 = arith.mulf %20, %22 : vector<6x256xf32>
    %24 = vector.extract_strided_slice %11 {offsets = [0, 16], sizes = [6, 256], strides = [1, 1]} : vector<6x290xf32> to vector<6x256xf32>
    %25 = vector.extract_strided_slice %2 {offsets = [3, 0], sizes = [1, 256], strides = [1, 1]} : vector<9x256xf32> to vector<1x256xf32>
    %26 = vector.broadcast %25 : vector<1x256xf32> to vector<6x256xf32>
    %27 = arith.mulf %24, %26 : vector<6x256xf32>
    %28 = vector.extract_strided_slice %11 {offsets = [0, 17], sizes = [6, 256], strides = [1, 1]} : vector<6x290xf32> to vector<6x256xf32>
    %29 = vector.extract_strided_slice %2 {offsets = [4, 0], sizes = [1, 256], strides = [1, 1]} : vector<9x256xf32> to vector<1x256xf32>
    %30 = vector.broadcast %29 : vector<1x256xf32> to vector<6x256xf32>
    %31 = arith.mulf %28, %30 : vector<6x256xf32>
    %32 = vector.extract_strided_slice %11 {offsets = [0, 18], sizes = [6, 256], strides = [1, 1]} : vector<6x290xf32> to vector<6x256xf32>
    %33 = vector.extract_strided_slice %2 {offsets = [5, 0], sizes = [1, 256], strides = [1, 1]} : vector<9x256xf32> to vector<1x256xf32>
    %34 = vector.broadcast %33 : vector<1x256xf32> to vector<6x256xf32>
    %35 = arith.mulf %32, %34 : vector<6x256xf32>
    %36 = vector.extract_strided_slice %11 {offsets = [0, 32], sizes = [6, 256], strides = [1, 1]} : vector<6x290xf32> to vector<6x256xf32>
    %37 = vector.extract_strided_slice %2 {offsets = [6, 0], sizes = [1, 256], strides = [1, 1]} : vector<9x256xf32> to vector<1x256xf32>
    %38 = vector.broadcast %37 : vector<1x256xf32> to vector<6x256xf32>
    %39 = arith.mulf %36, %38 : vector<6x256xf32>
    %40 = vector.extract_strided_slice %11 {offsets = [0, 33], sizes = [6, 256], strides = [1, 1]} : vector<6x290xf32> to vector<6x256xf32>
    %41 = vector.extract_strided_slice %2 {offsets = [7, 0], sizes = [1, 256], strides = [1, 1]} : vector<9x256xf32> to vector<1x256xf32>
    %42 = vector.broadcast %41 : vector<1x256xf32> to vector<6x256xf32>
    %43 = arith.mulf %40, %42 : vector<6x256xf32>
    %44 = vector.extract_strided_slice %11 {offsets = [0, 34], sizes = [6, 256], strides = [1, 1]} : vector<6x290xf32> to vector<6x256xf32>
    %45 = vector.extract_strided_slice %2 {offsets = [8, 0], sizes = [1, 256], strides = [1, 1]} : vector<9x256xf32> to vector<1x256xf32>
    %46 = vector.broadcast %45 : vector<1x256xf32> to vector<6x256xf32>
    %47 = arith.mulf %44, %46 : vector<6x256xf32>
    %48 = tpu.concatenate %15, %19, %23, %27, %31, %35, %39, %43, %47 in 0 : vector<6x256xf32>, vector<6x256xf32>, vector<6x256xf32>, vector<6x256xf32>, vector<6x256xf32>, vector<6x256xf32>, vector<6x256xf32>, vector<6x256xf32>, vector<6x256xf32> -> vector<54x256xf32>
    %cst_15 = arith.constant dense<0.000000e+00> : vector<2x256xf32>
    %49 = tpu.matmul %0, %48, %cst_15 {dimension_numbers = #tpu.dot_dimension_numbers<[1], [0], [0], [1], [0, 0, 1, 1], [], []>} : vector<2x54xf32>, vector<54x256xf32>, vector<2x256xf32> -> vector<2x256xf32>
    %50 = vector.broadcast %1 : vector<2x1xf32> to vector<2x256xf32>
    %51 = arith.addf %49, %50 : vector<2x256xf32>
    %c0_16 = arith.constant 0 : index
    %c0_17 = arith.constant 0 : index
    %c0_18 = arith.constant 0 : index
    %52 = vector.load %arg3[%c0_16, %c0_17, %c0_18] : memref<1x6x64xf32, #tpu.memory_space<vmem>>, vector<1x6x64xf32>
    %53 = vector.shape_cast %52 : vector<1x6x64xf32> to vector<6x64xf32>
    %c0_19 = arith.constant 0 : index
    %c0_20 = arith.constant 0 : index
    %c0_21 = arith.constant 0 : index
    %54 = vector.load %arg4[%c0_19, %c0_20, %c0_21] : memref<1x6x64xf32, #tpu.memory_space<vmem>>, vector<1x6x64xf32>
    %55 = vector.shape_cast %54 : vector<1x6x64xf32> to vector<6x64xf32>
    %56 = arith.subf %53, %55 : vector<6x64xf32>
    %cst_22 = arith.constant 0.000000e+00 : f32
    %57 = vector.broadcast %cst_22 : f32 to vector<6x9xf32>
    %58 = tpu.concatenate %57, %56, %57 in 1 : vector<6x9xf32>, vector<6x64xf32>, vector<6x9xf32> -> vector<6x82xf32>
    %59 = vector.extract_strided_slice %58 {offsets = [0, 0], sizes = [6, 64], strides = [1, 1]} : vector<6x82xf32> to vector<6x64xf32>
    %60 = vector.extract_strided_slice %3 {offsets = [0, 0], sizes = [1, 64], strides = [1, 1]} : vector<9x64xf32> to vector<1x64xf32>
    %61 = vector.broadcast %60 : vector<1x64xf32> to vector<6x64xf32>
    %62 = arith.mulf %59, %61 : vector<6x64xf32>
    %63 = vector.extract_strided_slice %58 {offsets = [0, 1], sizes = [6, 64], strides = [1, 1]} : vector<6x82xf32> to vector<6x64xf32>
    %64 = vector.extract_strided_slice %3 {offsets = [1, 0], sizes = [1, 64], strides = [1, 1]} : vector<9x64xf32> to vector<1x64xf32>
    %65 = vector.broadcast %64 : vector<1x64xf32> to vector<6x64xf32>
    %66 = arith.mulf %63, %65 : vector<6x64xf32>
    %67 = vector.extract_strided_slice %58 {offsets = [0, 2], sizes = [6, 64], strides = [1, 1]} : vector<6x82xf32> to vector<6x64xf32>
    %68 = vector.extract_strided_slice %3 {offsets = [2, 0], sizes = [1, 64], strides = [1, 1]} : vector<9x64xf32> to vector<1x64xf32>
    %69 = vector.broadcast %68 : vector<1x64xf32> to vector<6x64xf32>
    %70 = arith.mulf %67, %69 : vector<6x64xf32>
    %71 = vector.extract_strided_slice %58 {offsets = [0, 8], sizes = [6, 64], strides = [1, 1]} : vector<6x82xf32> to vector<6x64xf32>
    %72 = vector.extract_strided_slice %3 {offsets = [3, 0], sizes = [1, 64], strides = [1, 1]} : vector<9x64xf32> to vector<1x64xf32>
    %73 = vector.broadcast %72 : vector<1x64xf32> to vector<6x64xf32>
    %74 = arith.mulf %71, %73 : vector<6x64xf32>
    %75 = vector.extract_strided_slice %58 {offsets = [0, 9], sizes = [6, 64], strides = [1, 1]} : vector<6x82xf32> to vector<6x64xf32>
    %76 = vector.extract_strided_slice %3 {offsets = [4, 0], sizes = [1, 64], strides = [1, 1]} : vector<9x64xf32> to vector<1x64xf32>
    %77 = vector.broadcast %76 : vector<1x64xf32> to vector<6x64xf32>
    %78 = arith.mulf %75, %77 : vector<6x64xf32>
    %79 = vector.extract_strided_slice %58 {offsets = [0, 10], sizes = [6, 64], strides = [1, 1]} : vector<6x82xf32> to vector<6x64xf32>
    %80 = vector.extract_strided_slice %3 {offsets = [5, 0], sizes = [1, 64], strides = [1, 1]} : vector<9x64xf32> to vector<1x64xf32>
    %81 = vector.broadcast %80 : vector<1x64xf32> to vector<6x64xf32>
    %82 = arith.mulf %79, %81 : vector<6x64xf32>
    %83 = vector.extract_strided_slice %58 {offsets = [0, 16], sizes = [6, 64], strides = [1, 1]} : vector<6x82xf32> to vector<6x64xf32>
    %84 = vector.extract_strided_slice %3 {offsets = [6, 0], sizes = [1, 64], strides = [1, 1]} : vector<9x64xf32> to vector<1x64xf32>
    %85 = vector.broadcast %84 : vector<1x64xf32> to vector<6x64xf32>
    %86 = arith.mulf %83, %85 : vector<6x64xf32>
    %87 = vector.extract_strided_slice %58 {offsets = [0, 17], sizes = [6, 64], strides = [1, 1]} : vector<6x82xf32> to vector<6x64xf32>
    %88 = vector.extract_strided_slice %3 {offsets = [7, 0], sizes = [1, 64], strides = [1, 1]} : vector<9x64xf32> to vector<1x64xf32>
    %89 = vector.broadcast %88 : vector<1x64xf32> to vector<6x64xf32>
    %90 = arith.mulf %87, %89 : vector<6x64xf32>
    %91 = vector.extract_strided_slice %58 {offsets = [0, 18], sizes = [6, 64], strides = [1, 1]} : vector<6x82xf32> to vector<6x64xf32>
    %92 = vector.extract_strided_slice %3 {offsets = [8, 0], sizes = [1, 64], strides = [1, 1]} : vector<9x64xf32> to vector<1x64xf32>
    %93 = vector.broadcast %92 : vector<1x64xf32> to vector<6x64xf32>
    %94 = arith.mulf %91, %93 : vector<6x64xf32>
    %95 = tpu.concatenate %62, %66, %70, %74, %78, %82, %86, %90, %94 in 0 : vector<6x64xf32>, vector<6x64xf32>, vector<6x64xf32>, vector<6x64xf32>, vector<6x64xf32>, vector<6x64xf32>, vector<6x64xf32>, vector<6x64xf32>, vector<6x64xf32> -> vector<54x64xf32>
    %cst_23 = arith.constant dense<0.000000e+00> : vector<2x64xf32>
    %96 = tpu.matmul %0, %95, %cst_23 {dimension_numbers = #tpu.dot_dimension_numbers<[1], [0], [0], [1], [0, 0, 1, 1], [], []>} : vector<2x54xf32>, vector<54x64xf32>, vector<2x64xf32> -> vector<2x64xf32>
    %97 = vector.broadcast %1 : vector<2x1xf32> to vector<2x64xf32>
    %98 = arith.addf %96, %97 : vector<2x64xf32>
    %c0_24 = arith.constant 0 : index
    %c0_25 = arith.constant 0 : index
    %c0_26 = arith.constant 0 : index
    %99 = vector.load %arg5[%c0_24, %c0_25, %c0_26] : memref<1x6x16xf32, #tpu.memory_space<vmem>>, vector<1x6x16xf32>
    %100 = vector.shape_cast %99 : vector<1x6x16xf32> to vector<6x16xf32>
    %c0_27 = arith.constant 0 : index
    %c0_28 = arith.constant 0 : index
    %c0_29 = arith.constant 0 : index
    %101 = vector.load %arg6[%c0_27, %c0_28, %c0_29] : memref<1x6x16xf32, #tpu.memory_space<vmem>>, vector<1x6x16xf32>
    %102 = vector.shape_cast %101 : vector<1x6x16xf32> to vector<6x16xf32>
    %103 = arith.subf %100, %102 : vector<6x16xf32>
    %cst_30 = arith.constant 0.000000e+00 : f32
    %104 = vector.broadcast %cst_30 : f32 to vector<6x5xf32>
    %105 = tpu.concatenate %104, %103, %104 in 1 : vector<6x5xf32>, vector<6x16xf32>, vector<6x5xf32> -> vector<6x26xf32>
    %106 = vector.extract_strided_slice %105 {offsets = [0, 0], sizes = [6, 16], strides = [1, 1]} : vector<6x26xf32> to vector<6x16xf32>
    %107 = vector.extract_strided_slice %4 {offsets = [0, 0], sizes = [1, 16], strides = [1, 1]} : vector<9x16xf32> to vector<1x16xf32>
    %108 = vector.broadcast %107 : vector<1x16xf32> to vector<6x16xf32>
    %109 = arith.mulf %106, %108 : vector<6x16xf32>
    %110 = vector.extract_strided_slice %105 {offsets = [0, 1], sizes = [6, 16], strides = [1, 1]} : vector<6x26xf32> to vector<6x16xf32>
    %111 = vector.extract_strided_slice %4 {offsets = [1, 0], sizes = [1, 16], strides = [1, 1]} : vector<9x16xf32> to vector<1x16xf32>
    %112 = vector.broadcast %111 : vector<1x16xf32> to vector<6x16xf32>
    %113 = arith.mulf %110, %112 : vector<6x16xf32>
    %114 = vector.extract_strided_slice %105 {offsets = [0, 2], sizes = [6, 16], strides = [1, 1]} : vector<6x26xf32> to vector<6x16xf32>
    %115 = vector.extract_strided_slice %4 {offsets = [2, 0], sizes = [1, 16], strides = [1, 1]} : vector<9x16xf32> to vector<1x16xf32>
    %116 = vector.broadcast %115 : vector<1x16xf32> to vector<6x16xf32>
    %117 = arith.mulf %114, %116 : vector<6x16xf32>
    %118 = vector.extract_strided_slice %105 {offsets = [0, 4], sizes = [6, 16], strides = [1, 1]} : vector<6x26xf32> to vector<6x16xf32>
    %119 = vector.extract_strided_slice %4 {offsets = [3, 0], sizes = [1, 16], strides = [1, 1]} : vector<9x16xf32> to vector<1x16xf32>
    %120 = vector.broadcast %119 : vector<1x16xf32> to vector<6x16xf32>
    %121 = arith.mulf %118, %120 : vector<6x16xf32>
    %122 = vector.extract_strided_slice %105 {offsets = [0, 5], sizes = [6, 16], strides = [1, 1]} : vector<6x26xf32> to vector<6x16xf32>
    %123 = vector.extract_strided_slice %4 {offsets = [4, 0], sizes = [1, 16], strides = [1, 1]} : vector<9x16xf32> to vector<1x16xf32>
    %124 = vector.broadcast %123 : vector<1x16xf32> to vector<6x16xf32>
    %125 = arith.mulf %122, %124 : vector<6x16xf32>
    %126 = vector.extract_strided_slice %105 {offsets = [0, 6], sizes = [6, 16], strides = [1, 1]} : vector<6x26xf32> to vector<6x16xf32>
    %127 = vector.extract_strided_slice %4 {offsets = [5, 0], sizes = [1, 16], strides = [1, 1]} : vector<9x16xf32> to vector<1x16xf32>
    %128 = vector.broadcast %127 : vector<1x16xf32> to vector<6x16xf32>
    %129 = arith.mulf %126, %128 : vector<6x16xf32>
    %130 = vector.extract_strided_slice %105 {offsets = [0, 8], sizes = [6, 16], strides = [1, 1]} : vector<6x26xf32> to vector<6x16xf32>
    %131 = vector.extract_strided_slice %4 {offsets = [6, 0], sizes = [1, 16], strides = [1, 1]} : vector<9x16xf32> to vector<1x16xf32>
    %132 = vector.broadcast %131 : vector<1x16xf32> to vector<6x16xf32>
    %133 = arith.mulf %130, %132 : vector<6x16xf32>
    %134 = vector.extract_strided_slice %105 {offsets = [0, 9], sizes = [6, 16], strides = [1, 1]} : vector<6x26xf32> to vector<6x16xf32>
    %135 = vector.extract_strided_slice %4 {offsets = [7, 0], sizes = [1, 16], strides = [1, 1]} : vector<9x16xf32> to vector<1x16xf32>
    %136 = vector.broadcast %135 : vector<1x16xf32> to vector<6x16xf32>
    %137 = arith.mulf %134, %136 : vector<6x16xf32>
    %138 = vector.extract_strided_slice %105 {offsets = [0, 10], sizes = [6, 16], strides = [1, 1]} : vector<6x26xf32> to vector<6x16xf32>
    %139 = vector.extract_strided_slice %4 {offsets = [8, 0], sizes = [1, 16], strides = [1, 1]} : vector<9x16xf32> to vector<1x16xf32>
    %140 = vector.broadcast %139 : vector<1x16xf32> to vector<6x16xf32>
    %141 = arith.mulf %138, %140 : vector<6x16xf32>
    %142 = tpu.concatenate %109, %113, %117, %121, %125, %129, %133, %137, %141 in 0 : vector<6x16xf32>, vector<6x16xf32>, vector<6x16xf32>, vector<6x16xf32>, vector<6x16xf32>, vector<6x16xf32>, vector<6x16xf32>, vector<6x16xf32>, vector<6x16xf32> -> vector<54x16xf32>
    %cst_31 = arith.constant dense<0.000000e+00> : vector<2x16xf32>
    %143 = tpu.matmul %0, %142, %cst_31 {dimension_numbers = #tpu.dot_dimension_numbers<[1], [0], [0], [1], [0, 0, 1, 1], [], []>} : vector<2x54xf32>, vector<54x16xf32>, vector<2x16xf32> -> vector<2x16xf32>
    %144 = vector.broadcast %1 : vector<2x1xf32> to vector<2x16xf32>
    %145 = arith.addf %143, %144 : vector<2x16xf32>
    %c0_32 = arith.constant 0 : index
    %c0_33 = arith.constant 0 : index
    %146 = vector.load %arg12[%c0_32, %c0_33] : memref<8x2xf32, #tpu.memory_space<vmem>>, vector<8x2xf32>
    %c0_34 = arith.constant 0 : index
    %c0_35 = arith.constant 0 : index
    %147 = vector.load %arg13[%c0_34, %c0_35] : memref<2x1xf32, #tpu.memory_space<vmem>>, vector<2x1xf32>
    %c0_36 = arith.constant 0 : index
    %c0_37 = arith.constant 0 : index
    %148 = vector.load %arg18[%c0_36, %c0_37] : memref<256x256xf32, #tpu.memory_space<vmem>>, vector<256x256xf32>
    %cst_38 = arith.constant dense<0.000000e+00> : vector<8x64xf32>
    %149 = tpu.matmul %146, %98, %cst_38 {dimension_numbers = #tpu.dot_dimension_numbers<[1], [0], [0], [1], [0, 0, 1, 1], [], []>} : vector<8x2xf32>, vector<2x64xf32>, vector<8x64xf32> -> vector<8x64xf32>
    %150 = vector.extract_strided_slice %149 {offsets = [0, 0], sizes = [2, 64], strides = [1, 1]} : vector<8x64xf32> to vector<2x64xf32>
    %151 = vector.extract_strided_slice %149 {offsets = [2, 0], sizes = [2, 64], strides = [1, 1]} : vector<8x64xf32> to vector<2x64xf32>
    %152 = vector.extract_strided_slice %149 {offsets = [4, 0], sizes = [2, 64], strides = [1, 1]} : vector<8x64xf32> to vector<2x64xf32>
    %153 = vector.extract_strided_slice %149 {offsets = [6, 0], sizes = [2, 64], strides = [1, 1]} : vector<8x64xf32> to vector<2x64xf32>
    %154 = tpu.concatenate %150, %151, %152, %153 in 1 : vector<2x64xf32>, vector<2x64xf32>, vector<2x64xf32>, vector<2x64xf32> -> vector<2x256xf32>
    %cst_39 = arith.constant dense<0.000000e+00> : vector<2x256xf32>
    %155 = tpu.matmul %154, %148, %cst_39 {dimension_numbers = #tpu.dot_dimension_numbers<[1], [0], [0], [1], [0, 0, 1, 1], [], []>} : vector<2x256xf32>, vector<256x256xf32>, vector<2x256xf32> -> vector<2x256xf32>
    %156 = vector.broadcast %147 : vector<2x1xf32> to vector<2x256xf32>
    %157 = arith.addf %155, %156 : vector<2x256xf32>
    %c0_40 = arith.constant 0 : index
    %c0_41 = arith.constant 0 : index
    %158 = vector.load %arg14[%c0_40, %c0_41] : memref<8x2xf32, #tpu.memory_space<vmem>>, vector<8x2xf32>
    %c0_42 = arith.constant 0 : index
    %c0_43 = arith.constant 0 : index
    %159 = vector.load %arg15[%c0_42, %c0_43] : memref<2x1xf32, #tpu.memory_space<vmem>>, vector<2x1xf32>
    %c0_44 = arith.constant 0 : index
    %c0_45 = arith.constant 0 : index
    %160 = vector.load %arg19[%c0_44, %c0_45] : memref<64x64xf32, #tpu.memory_space<vmem>>, vector<64x64xf32>
    %cst_46 = arith.constant dense<0.000000e+00> : vector<8x16xf32>
    %161 = tpu.matmul %158, %145, %cst_46 {dimension_numbers = #tpu.dot_dimension_numbers<[1], [0], [0], [1], [0, 0, 1, 1], [], []>} : vector<8x2xf32>, vector<2x16xf32>, vector<8x16xf32> -> vector<8x16xf32>
    %162 = vector.extract_strided_slice %161 {offsets = [0, 0], sizes = [2, 16], strides = [1, 1]} : vector<8x16xf32> to vector<2x16xf32>
    %163 = vector.extract_strided_slice %161 {offsets = [2, 0], sizes = [2, 16], strides = [1, 1]} : vector<8x16xf32> to vector<2x16xf32>
    %164 = vector.extract_strided_slice %161 {offsets = [4, 0], sizes = [2, 16], strides = [1, 1]} : vector<8x16xf32> to vector<2x16xf32>
    %165 = vector.extract_strided_slice %161 {offsets = [6, 0], sizes = [2, 16], strides = [1, 1]} : vector<8x16xf32> to vector<2x16xf32>
    %166 = tpu.concatenate %162, %163, %164, %165 in 1 : vector<2x16xf32>, vector<2x16xf32>, vector<2x16xf32>, vector<2x16xf32> -> vector<2x64xf32>
    %cst_47 = arith.constant dense<0.000000e+00> : vector<2x64xf32>
    %167 = tpu.matmul %166, %160, %cst_47 {dimension_numbers = #tpu.dot_dimension_numbers<[1], [0], [0], [1], [0, 0, 1, 1], [], []>} : vector<2x64xf32>, vector<64x64xf32>, vector<2x64xf32> -> vector<2x64xf32>
    %168 = vector.broadcast %159 : vector<2x1xf32> to vector<2x64xf32>
    %169 = arith.addf %167, %168 : vector<2x64xf32>
    %c0_48 = arith.constant 0 : index
    %c0_49 = arith.constant 0 : index
    %170 = vector.load %arg16[%c0_48, %c0_49] : memref<32x2xf32, #tpu.memory_space<vmem>>, vector<32x2xf32>
    %c0_50 = arith.constant 0 : index
    %c0_51 = arith.constant 0 : index
    %171 = vector.load %arg17[%c0_50, %c0_51] : memref<2x1xf32, #tpu.memory_space<vmem>>, vector<2x1xf32>
    %c0_52 = arith.constant 0 : index
    %c0_53 = arith.constant 0 : index
    %172 = vector.load %arg20[%c0_52, %c0_53] : memref<256x256xf32, #tpu.memory_space<vmem>>, vector<256x256xf32>
    %cst_54 = arith.constant dense<0.000000e+00> : vector<32x16xf32>
    %173 = tpu.matmul %170, %145, %cst_54 {dimension_numbers = #tpu.dot_dimension_numbers<[1], [0], [0], [1], [0, 0, 1, 1], [], []>} : vector<32x2xf32>, vector<2x16xf32>, vector<32x16xf32> -> vector<32x16xf32>
    %174 = vector.extract_strided_slice %173 {offsets = [0, 0], sizes = [2, 16], strides = [1, 1]} : vector<32x16xf32> to vector<2x16xf32>
    %175 = vector.extract_strided_slice %173 {offsets = [2, 0], sizes = [2, 16], strides = [1, 1]} : vector<32x16xf32> to vector<2x16xf32>
    %176 = vector.extract_strided_slice %173 {offsets = [4, 0], sizes = [2, 16], strides = [1, 1]} : vector<32x16xf32> to vector<2x16xf32>
    %177 = vector.extract_strided_slice %173 {offsets = [6, 0], sizes = [2, 16], strides = [1, 1]} : vector<32x16xf32> to vector<2x16xf32>
    %178 = vector.extract_strided_slice %173 {offsets = [8, 0], sizes = [2, 16], strides = [1, 1]} : vector<32x16xf32> to vector<2x16xf32>
    %179 = vector.extract_strided_slice %173 {offsets = [10, 0], sizes = [2, 16], strides = [1, 1]} : vector<32x16xf32> to vector<2x16xf32>
    %180 = vector.extract_strided_slice %173 {offsets = [12, 0], sizes = [2, 16], strides = [1, 1]} : vector<32x16xf32> to vector<2x16xf32>
    %181 = vector.extract_strided_slice %173 {offsets = [14, 0], sizes = [2, 16], strides = [1, 1]} : vector<32x16xf32> to vector<2x16xf32>
    %182 = vector.extract_strided_slice %173 {offsets = [16, 0], sizes = [2, 16], strides = [1, 1]} : vector<32x16xf32> to vector<2x16xf32>
    %183 = vector.extract_strided_slice %173 {offsets = [18, 0], sizes = [2, 16], strides = [1, 1]} : vector<32x16xf32> to vector<2x16xf32>
    %184 = vector.extract_strided_slice %173 {offsets = [20, 0], sizes = [2, 16], strides = [1, 1]} : vector<32x16xf32> to vector<2x16xf32>
    %185 = vector.extract_strided_slice %173 {offsets = [22, 0], sizes = [2, 16], strides = [1, 1]} : vector<32x16xf32> to vector<2x16xf32>
    %186 = vector.extract_strided_slice %173 {offsets = [24, 0], sizes = [2, 16], strides = [1, 1]} : vector<32x16xf32> to vector<2x16xf32>
    %187 = vector.extract_strided_slice %173 {offsets = [26, 0], sizes = [2, 16], strides = [1, 1]} : vector<32x16xf32> to vector<2x16xf32>
    %188 = vector.extract_strided_slice %173 {offsets = [28, 0], sizes = [2, 16], strides = [1, 1]} : vector<32x16xf32> to vector<2x16xf32>
    %189 = vector.extract_strided_slice %173 {offsets = [30, 0], sizes = [2, 16], strides = [1, 1]} : vector<32x16xf32> to vector<2x16xf32>
    %190 = tpu.concatenate %174, %175, %176, %177, %178, %179, %180, %181, %182, %183, %184, %185, %186, %187, %188, %189 in 1 : vector<2x16xf32>, vector<2x16xf32>, vector<2x16xf32>, vector<2x16xf32>, vector<2x16xf32>, vector<2x16xf32>, vector<2x16xf32>, vector<2x16xf32>, vector<2x16xf32>, vector<2x16xf32>, vector<2x16xf32>, vector<2x16xf32>, vector<2x16xf32>, vector<2x16xf32>, vector<2x16xf32>, vector<2x16xf32> -> vector<2x256xf32>
    %cst_55 = arith.constant dense<0.000000e+00> : vector<2x256xf32>
    %191 = tpu.matmul %190, %172, %cst_55 {dimension_numbers = #tpu.dot_dimension_numbers<[1], [0], [0], [1], [0, 0, 1, 1], [], []>} : vector<2x256xf32>, vector<256x256xf32>, vector<2x256xf32> -> vector<2x256xf32>
    %192 = vector.broadcast %171 : vector<2x1xf32> to vector<2x256xf32>
    %193 = arith.addf %191, %192 : vector<2x256xf32>
    %c0_56 = arith.constant 0 : index
    %c0_57 = arith.constant 0 : index
    %194 = vector.load %arg21[%c0_56, %c0_57] : memref<256x64xf32, #tpu.memory_space<vmem>>, vector<256x64xf32>
    %cst_58 = arith.constant 0.000000e+00 : f32
    %195 = vector.broadcast %cst_58 : f32 to vector<2x17xf32>
    %196 = tpu.concatenate %51, %195 in 1 : vector<2x256xf32>, vector<2x17xf32> -> vector<2x273xf32>
    %197 = vector.extract_strided_slice %196 {offsets = [0, 0], sizes = [2, 256], strides = [1, 1]} : vector<2x273xf32> to vector<2x256xf32>
    %198 = vector.extract_strided_slice %196 {offsets = [0, 1], sizes = [2, 256], strides = [1, 1]} : vector<2x273xf32> to vector<2x256xf32>
    %199 = arith.maximumf %197, %198 : vector<2x256xf32>
    %200 = vector.extract_strided_slice %196 {offsets = [0, 16], sizes = [2, 256], strides = [1, 1]} : vector<2x273xf32> to vector<2x256xf32>
    %201 = vector.extract_strided_slice %196 {offsets = [0, 17], sizes = [2, 256], strides = [1, 1]} : vector<2x273xf32> to vector<2x256xf32>
    %202 = arith.maximumf %200, %201 : vector<2x256xf32>
    %203 = arith.maximumf %199, %202 : vector<2x256xf32>
    %cst_59 = arith.constant dense<0.000000e+00> : vector<2x64xf32>
    %204 = tpu.matmul %203, %194, %cst_59 {dimension_numbers = #tpu.dot_dimension_numbers<[1], [0], [0], [1], [0, 0, 1, 1], [], []>} : vector<2x256xf32>, vector<256x64xf32>, vector<2x64xf32> -> vector<2x64xf32>
    %c0_60 = arith.constant 0 : index
    %c0_61 = arith.constant 0 : index
    %205 = vector.load %arg22[%c0_60, %c0_61] : memref<64x16xf32, #tpu.memory_space<vmem>>, vector<64x16xf32>
    %cst_62 = arith.constant 0.000000e+00 : f32
    %206 = vector.broadcast %cst_62 : f32 to vector<2x9xf32>
    %207 = tpu.concatenate %204, %206 in 1 : vector<2x64xf32>, vector<2x9xf32> -> vector<2x73xf32>
    %208 = vector.extract_strided_slice %207 {offsets = [0, 0], sizes = [2, 64], strides = [1, 1]} : vector<2x73xf32> to vector<2x64xf32>
    %209 = vector.extract_strided_slice %207 {offsets = [0, 1], sizes = [2, 64], strides = [1, 1]} : vector<2x73xf32> to vector<2x64xf32>
    %210 = arith.maximumf %208, %209 : vector<2x64xf32>
    %211 = vector.extract_strided_slice %207 {offsets = [0, 8], sizes = [2, 64], strides = [1, 1]} : vector<2x73xf32> to vector<2x64xf32>
    %212 = vector.extract_strided_slice %207 {offsets = [0, 9], sizes = [2, 64], strides = [1, 1]} : vector<2x73xf32> to vector<2x64xf32>
    %213 = arith.maximumf %211, %212 : vector<2x64xf32>
    %214 = arith.maximumf %210, %213 : vector<2x64xf32>
    %cst_63 = arith.constant dense<0.000000e+00> : vector<2x16xf32>
    %215 = tpu.matmul %214, %205, %cst_63 {dimension_numbers = #tpu.dot_dimension_numbers<[1], [0], [0], [1], [0, 0, 1, 1], [], []>} : vector<2x64xf32>, vector<64x16xf32>, vector<2x16xf32> -> vector<2x16xf32>
    %c0_64 = arith.constant 0 : index
    %c0_65 = arith.constant 0 : index
    %216 = vector.load %arg22[%c0_64, %c0_65] : memref<64x16xf32, #tpu.memory_space<vmem>>, vector<64x16xf32>
    %cst_66 = arith.constant 0.000000e+00 : f32
    %217 = vector.broadcast %cst_66 : f32 to vector<2x9xf32>
    %218 = tpu.concatenate %98, %217 in 1 : vector<2x64xf32>, vector<2x9xf32> -> vector<2x73xf32>
    %219 = vector.extract_strided_slice %218 {offsets = [0, 0], sizes = [2, 64], strides = [1, 1]} : vector<2x73xf32> to vector<2x64xf32>
    %220 = vector.extract_strided_slice %218 {offsets = [0, 1], sizes = [2, 64], strides = [1, 1]} : vector<2x73xf32> to vector<2x64xf32>
    %221 = arith.maximumf %219, %220 : vector<2x64xf32>
    %222 = vector.extract_strided_slice %218 {offsets = [0, 8], sizes = [2, 64], strides = [1, 1]} : vector<2x73xf32> to vector<2x64xf32>
    %223 = vector.extract_strided_slice %218 {offsets = [0, 9], sizes = [2, 64], strides = [1, 1]} : vector<2x73xf32> to vector<2x64xf32>
    %224 = arith.maximumf %222, %223 : vector<2x64xf32>
    %225 = arith.maximumf %221, %224 : vector<2x64xf32>
    %cst_67 = arith.constant dense<0.000000e+00> : vector<2x16xf32>
    %226 = tpu.matmul %225, %216, %cst_67 {dimension_numbers = #tpu.dot_dimension_numbers<[1], [0], [0], [1], [0, 0, 1, 1], [], []>} : vector<2x64xf32>, vector<64x16xf32>, vector<2x16xf32> -> vector<2x16xf32>
    %c0_68 = arith.constant 0 : index
    %c0_69 = arith.constant 0 : index
    %227 = vector.load %arg23[%c0_68, %c0_69] : memref<6x6xf32, #tpu.memory_space<vmem>>, vector<6x6xf32>
    %c0_70 = arith.constant 0 : index
    %c0_71 = arith.constant 0 : index
    %228 = vector.load %arg26[%c0_70, %c0_71] : memref<6x1xf32, #tpu.memory_space<vmem>>, vector<6x1xf32>
    %229 = tpu.concatenate %51, %157, %193 in 0 : vector<2x256xf32>, vector<2x256xf32>, vector<2x256xf32> -> vector<6x256xf32>
    %cst_72 = arith.constant dense<0.000000e+00> : vector<6x256xf32>
    %230 = tpu.matmul %227, %229, %cst_72 {dimension_numbers = #tpu.dot_dimension_numbers<[1], [0], [0], [1], [0, 0, 1, 1], [], []>} : vector<6x6xf32>, vector<6x256xf32>, vector<6x256xf32> -> vector<6x256xf32>
    %231 = vector.broadcast %228 : vector<6x1xf32> to vector<6x256xf32>
    %232 = arith.addf %230, %231 : vector<6x256xf32>
    %c0_73 = arith.constant 0 : index
    %c0_74 = arith.constant 0 : index
    %c0_75 = arith.constant 0 : index
    %233 = vector.load %arg29[%c0_73, %c0_74, %c0_75] : memref<1x6x256xf32, #tpu.memory_space<vmem>>, vector<1x6x256xf32>
    %234 = vector.shape_cast %233 : vector<1x6x256xf32> to vector<6x256xf32>
    %235 = vector.shape_cast %232 : vector<6x256xf32> to vector<1x6x256xf32>
    tpu.vector_store %arg29[%c0_73, %c0_74, %c0_75], %235 {strides = array<i32>} : memref<1x6x256xf32, #tpu.memory_space<vmem>>, vector<1x6x256xf32>,
    %c0_76 = arith.constant 0 : index
    %c0_77 = arith.constant 0 : index
    %236 = vector.load %arg24[%c0_76, %c0_77] : memref<6x6xf32, #tpu.memory_space<vmem>>, vector<6x6xf32>
    %c0_78 = arith.constant 0 : index
    %c0_79 = arith.constant 0 : index
    %237 = vector.load %arg27[%c0_78, %c0_79] : memref<6x1xf32, #tpu.memory_space<vmem>>, vector<6x1xf32>
    %238 = tpu.concatenate %204, %98, %169 in 0 : vector<2x64xf32>, vector<2x64xf32>, vector<2x64xf32> -> vector<6x64xf32>
    %cst_80 = arith.constant dense<0.000000e+00> : vector<6x64xf32>
    %239 = tpu.matmul %236, %238, %cst_80 {dimension_numbers = #tpu.dot_dimension_numbers<[1], [0], [0], [1], [0, 0, 1, 1], [], []>} : vector<6x6xf32>, vector<6x64xf32>, vector<6x64xf32> -> vector<6x64xf32>
    %240 = vector.broadcast %237 : vector<6x1xf32> to vector<6x64xf32>
    %241 = arith.addf %239, %240 : vector<6x64xf32>
    %c0_81 = arith.constant 0 : index
    %c0_82 = arith.constant 0 : index
    %c0_83 = arith.constant 0 : index
    %242 = vector.load %arg30[%c0_81, %c0_82, %c0_83] : memref<1x6x64xf32, #tpu.memory_space<vmem>>, vector<1x6x64xf32>
    %243 = vector.shape_cast %242 : vector<1x6x64xf32> to vector<6x64xf32>
    %244 = vector.shape_cast %241 : vector<6x64xf32> to vector<1x6x64xf32>
    tpu.vector_store %arg30[%c0_81, %c0_82, %c0_83], %244 {strides = array<i32>} : memref<1x6x64xf32, #tpu.memory_space<vmem>>, vector<1x6x64xf32>,
    %c0_84 = arith.constant 0 : index
    %c0_85 = arith.constant 0 : index
    %245 = vector.load %arg25[%c0_84, %c0_85] : memref<6x6xf32, #tpu.memory_space<vmem>>, vector<6x6xf32>
    %c0_86 = arith.constant 0 : index
    %c0_87 = arith.constant 0 : index
    %246 = vector.load %arg28[%c0_86, %c0_87] : memref<6x1xf32, #tpu.memory_space<vmem>>, vector<6x1xf32>
    %247 = tpu.concatenate %215, %226, %145 in 0 : vector<2x16xf32>, vector<2x16xf32>, vector<2x16xf32> -> vector<6x16xf32>
    %cst_88 = arith.constant dense<0.000000e+00> : vector<6x16xf32>
    %248 = tpu.matmul %245, %247, %cst_88 {dimension_numbers = #tpu.dot_dimension_numbers<[1], [0], [0], [1], [0, 0, 1, 1], [], []>} : vector<6x6xf32>, vector<6x16xf32>, vector<6x16xf32> -> vector<6x16xf32>
    %249 = vector.broadcast %246 : vector<6x1xf32> to vector<6x16xf32>
    %250 = arith.addf %248, %249 : vector<6x16xf32>
    %c0_89 = arith.constant 0 : index
    %c0_90 = arith.constant 0 : index
    %c0_91 = arith.constant 0 : index
    %251 = vector.load %arg31[%c0_89, %c0_90, %c0_91] : memref<1x6x16xf32, #tpu.memory_space<vmem>>, vector<1x6x16xf32>
    %252 = vector.shape_cast %251 : vector<1x6x16xf32> to vector<6x16xf32>
    %253 = vector.shape_cast %250 : vector<6x16xf32> to vector<1x6x16xf32>
    tpu.vector_store %arg31[%c0_89, %c0_90, %c0_91], %253 {strides = array<i32>} : memref<1x6x16xf32, #tpu.memory_space<vmem>>, vector<1x6x16xf32>,
    return
  }
  func.func @transform_0(%arg0: i32) -> (i32, i32, i32) {
    %c0_i32 = arith.constant 0 : i32
    %c0_i32_0 = arith.constant 0 : i32
    %c0_i32_1 = arith.constant 0 : i32
    return %arg0, %c0_i32, %c0_i32_0 : i32, i32, i32
  }
  func.func @transform_1(%arg0: i32) -> (i32, i32, i32) {
    %c0_i32 = arith.constant 0 : i32
    %c0_i32_0 = arith.constant 0 : i32
    %c0_i32_1 = arith.constant 0 : i32
    return %arg0, %c0_i32, %c0_i32_0 : i32, i32, i32
  }
  func.func @transform_2(%arg0: i32) -> (i32, i32, i32) {
    %c0_i32 = arith.constant 0 : i32
    %c0_i32_0 = arith.constant 0 : i32
    %c0_i32_1 = arith.constant 0 : i32
    return %arg0, %c0_i32, %c0_i32_0 : i32, i32, i32
  }
  func.func @transform_3(%arg0: i32) -> (i32, i32, i32) {
    %c0_i32 = arith.constant 0 : i32
    %c0_i32_0 = arith.constant 0 : i32
    %c0_i32_1 = arith.constant 0 : i32
    return %arg0, %c0_i32, %c0_i32_0 : i32, i32, i32
  }
  func.func @transform_4(%arg0: i32) -> (i32, i32, i32) {
    %c0_i32 = arith.constant 0 : i32
    %c0_i32_0 = arith.constant 0 : i32
    %c0_i32_1 = arith.constant 0 : i32
    return %arg0, %c0_i32, %c0_i32_0 : i32, i32, i32
  }
  func.func @transform_5(%arg0: i32) -> (i32, i32, i32) {
    %c0_i32 = arith.constant 0 : i32
    %c0_i32_0 = arith.constant 0 : i32
    %c0_i32_1 = arith.constant 0 : i32
    return %arg0, %c0_i32, %c0_i32_0 : i32, i32, i32
  }
  func.func @transform_6(%arg0: i32) -> (i32, i32) {
    %c0_i32 = arith.constant 0 : i32
    %c0_i32_0 = arith.constant 0 : i32
    %c0_i32_1 = arith.constant 0 : i32
    return %c0_i32, %c0_i32_0 : i32, i32
  }
  func.func @transform_7(%arg0: i32) -> (i32, i32) {
    %c0_i32 = arith.constant 0 : i32
    %c0_i32_0 = arith.constant 0 : i32
    %c0_i32_1 = arith.constant 0 : i32
    return %c0_i32, %c0_i32_0 : i32, i32
  }
  func.func @transform_8(%arg0: i32) -> (i32, i32) {
    %c0_i32 = arith.constant 0 : i32
    %c0_i32_0 = arith.constant 0 : i32
    %c0_i32_1 = arith.constant 0 : i32
    return %c0_i32, %c0_i32_0 : i32, i32
  }
  func.func @transform_9(%arg0: i32) -> (i32, i32) {
    %c0_i32 = arith.constant 0 : i32
    %c0_i32_0 = arith.constant 0 : i32
    %c0_i32_1 = arith.constant 0 : i32
    return %c0_i32, %c0_i32_0 : i32, i32
  }
  func.func @transform_10(%arg0: i32) -> (i32, i32) {
    %c0_i32 = arith.constant 0 : i32
    %c0_i32_0 = arith.constant 0 : i32
    %c0_i32_1 = arith.constant 0 : i32
    return %c0_i32, %c0_i32_0 : i32, i32
  }
  func.func @transform_11(%arg0: i32) -> (i32, i32) {
    %c0_i32 = arith.constant 0 : i32
    %c0_i32_0 = arith.constant 0 : i32
    %c0_i32_1 = arith.constant 0 : i32
    return %c0_i32, %c0_i32_0 : i32, i32
  }
  func.func @transform_12(%arg0: i32) -> (i32, i32) {
    %c0_i32 = arith.constant 0 : i32
    %c0_i32_0 = arith.constant 0 : i32
    %c0_i32_1 = arith.constant 0 : i32
    return %c0_i32, %c0_i32_0 : i32, i32
  }
  func.func @transform_13(%arg0: i32) -> (i32, i32) {
    %c0_i32 = arith.constant 0 : i32
    %c0_i32_0 = arith.constant 0 : i32
    %c0_i32_1 = arith.constant 0 : i32
    return %c0_i32, %c0_i32_0 : i32, i32
  }
  func.func @transform_14(%arg0: i32) -> (i32, i32) {
    %c0_i32 = arith.constant 0 : i32
    %c0_i32_0 = arith.constant 0 : i32
    %c0_i32_1 = arith.constant 0 : i32
    return %c0_i32, %c0_i32_0 : i32, i32
  }
  func.func @transform_15(%arg0: i32) -> (i32, i32) {
    %c0_i32 = arith.constant 0 : i32
    %c0_i32_0 = arith.constant 0 : i32
    %c0_i32_1 = arith.constant 0 : i32
    return %c0_i32, %c0_i32_0 : i32, i32
  }
  func.func @transform_16(%arg0: i32) -> (i32, i32) {
    %c0_i32 = arith.constant 0 : i32
    %c0_i32_0 = arith.constant 0 : i32
    %c0_i32_1 = arith.constant 0 : i32
    return %c0_i32, %c0_i32_0 : i32, i32
  }
  func.func @transform_17(%arg0: i32) -> (i32, i32) {
    %c0_i32 = arith.constant 0 : i32
    %c0_i32_0 = arith.constant 0 : i32
    %c0_i32_1 = arith.constant 0 : i32
    return %c0_i32, %c0_i32_0 : i32, i32
  }
  func.func @transform_18(%arg0: i32) -> (i32, i32) {
    %c0_i32 = arith.constant 0 : i32
    %c0_i32_0 = arith.constant 0 : i32
    %c0_i32_1 = arith.constant 0 : i32
    return %c0_i32, %c0_i32_0 : i32, i32
  }
  func.func @transform_19(%arg0: i32) -> (i32, i32) {
    %c0_i32 = arith.constant 0 : i32
    %c0_i32_0 = arith.constant 0 : i32
    %c0_i32_1 = arith.constant 0 : i32
    return %c0_i32, %c0_i32_0 : i32, i32
  }
  func.func @transform_20(%arg0: i32) -> (i32, i32) {
    %c0_i32 = arith.constant 0 : i32
    %c0_i32_0 = arith.constant 0 : i32
    %c0_i32_1 = arith.constant 0 : i32
    return %c0_i32, %c0_i32_0 : i32, i32
  }
  func.func @transform_21(%arg0: i32) -> (i32, i32) {
    %c0_i32 = arith.constant 0 : i32
    %c0_i32_0 = arith.constant 0 : i32
    %c0_i32_1 = arith.constant 0 : i32
    return %c0_i32, %c0_i32_0 : i32, i32
  }
  func.func @transform_22(%arg0: i32) -> (i32, i32) {
    %c0_i32 = arith.constant 0 : i32
    %c0_i32_0 = arith.constant 0 : i32
    %c0_i32_1 = arith.constant 0 : i32
    return %c0_i32, %c0_i32_0 : i32, i32
  }
  func.func @transform_23(%arg0: i32) -> (i32, i32) {
    %c0_i32 = arith.constant 0 : i32
    %c0_i32_0 = arith.constant 0 : i32
    %c0_i32_1 = arith.constant 0 : i32
    return %c0_i32, %c0_i32_0 : i32, i32
  }
  func.func @transform_24(%arg0: i32) -> (i32, i32) {
    %c0_i32 = arith.constant 0 : i32
    %c0_i32_0 = arith.constant 0 : i32
    %c0_i32_1 = arith.constant 0 : i32
    return %c0_i32, %c0_i32_0 : i32, i32
  }
  func.func @transform_25(%arg0: i32) -> (i32, i32) {
    %c0_i32 = arith.constant 0 : i32
    %c0_i32_0 = arith.constant 0 : i32
    %c0_i32_1 = arith.constant 0 : i32
    return %c0_i32, %c0_i32_0 : i32, i32
  }
  func.func @transform_26(%arg0: i32) -> (i32, i32) {
    %c0_i32 = arith.constant 0 : i32
    %c0_i32_0 = arith.constant 0 : i32
    %c0_i32_1 = arith.constant 0 : i32
    return %c0_i32, %c0_i32_0 : i32, i32
  }
  func.func @transform_27(%arg0: i32) -> (i32, i32) {
    %c0_i32 = arith.constant 0 : i32
    %c0_i32_0 = arith.constant 0 : i32
    %c0_i32_1 = arith.constant 0 : i32
    return %c0_i32, %c0_i32_0 : i32, i32
  }
  func.func @transform_28(%arg0: i32) -> (i32, i32, i32) {
    %c0_i32 = arith.constant 0 : i32
    %c0_i32_0 = arith.constant 0 : i32
    %c0_i32_1 = arith.constant 0 : i32
    return %arg0, %c0_i32, %c0_i32_0 : i32, i32, i32
  }
  func.func @transform_29(%arg0: i32) -> (i32, i32, i32) {
    %c0_i32 = arith.constant 0 : i32
    %c0_i32_0 = arith.constant 0 : i32
    %c0_i32_1 = arith.constant 0 : i32
    return %arg0, %c0_i32, %c0_i32_0 : i32, i32, i32
  }
  func.func @transform_30(%arg0: i32) -> (i32, i32, i32) {
    %c0_i32 = arith.constant 0 : i32
    %c0_i32_0 = arith.constant 0 : i32
    %c0_i32_1 = arith.constant 0 : i32
    return %arg0, %c0_i32, %c0_i32_0 : i32, i32, i32
  }
}

</mosaic_0001>

<bundles_post_ra>
// kernel: tpu_custom_call.1
= control target key start
LH: loop header
LB: loop body
LE: loop exit
PB: predicated region body
PF: predicated region fallthrough
CT: control target
= control target key end

     0   :  { %s4152_s6 = smov 1   ;;  %s4153_s10 = smov 2   ;;  %s5045_s0 = inlined_call_operand.smem [shape: u32[31], index: -1, kind: input, shape index: {}] }
   0x1   :  { %s4228_s5 = sld [smem:[%s5045_s0]]   ;;  %s4154_s14 = smov 3  }
   0x2   :  { %s4233_s9 = sld [smem:[%s5045_s0 + %s4152_s6]]   ;;  %s4155_s18 = smov 4  }
   0x3   :  { %s4238_s13 = sld [smem:[%s5045_s0 + %s4153_s10]]   ;;  %s4156_s22 = smov 5  }
   0x4   :  { %s4243_s17 = sld [smem:[%s5045_s0 + %s4154_s14]]   ;;  %s4157_s26 = smov 6  }
   0x5   :  { %s4248_s21 = sld [smem:[%s5045_s0 + %s4155_s18]]   ;;  %s4158_s30 = smov 7  }
   0x6   :  { %s4253_s25 = sld [smem:[%s5045_s0 + %s4156_s22]]   ;;  %s4159_s4 = smov 8  }
   0x7   :  { %s4258_s29 = sld [smem:[%s5045_s0 + %s4157_s26]]   ;;  %s4160_s10 = smov 9  }
   0x8   :  { %s4263_s3 = sld [smem:[%s5045_s0 + %s4158_s30]]   ;;  %s4161_s15 = smov 10  }
   0x9   :  { %s4268_s8 = sld [smem:[%s5045_s0 + %s4159_s4]]   ;;  %s4162_s20 = smov 11  }
   0xa   :  { %s4273_s14 = sld [smem:[%s5045_s0 + %s4160_s10]]   ;;  %s4163_s26 = smov 12  }
   0xb   :  { %s4278_s19 = sld [smem:[%s5045_s0 + %s4161_s15]]   ;;  %s4164_s1 = smov 13  }
   0xc   :  { %s4283_s24 = sld [smem:[%s5045_s0 + %s4162_s20]]   ;;  %s4165_s7 = smov 14  }
   0xd   :  { %s4288_s30 = sld [smem:[%s5045_s0 + %s4163_s26]]   ;;  %s4166_s15 = smov 15  }
   0xe   :  { %5063 = sst [smem:[#allocation5_spill]] %s4263_s3  ;;  %s4167_s22 = smov 16  }
   0xf   :  { %s4293_s6 = sld [smem:[%s5045_s0 + %s4164_s1]]   ;;  %s4168_s28 = smov 17  }
  0x10   :  { %s4298_s12 = sld [smem:[%s5045_s0 + %s4165_s7]]   ;;  %s4169_s7 = smov 18  }
  0x11   :  { %s4303_s20 = sld [smem:[%s5045_s0 + %s4166_s15]]   ;;  %s4170_s15 = smov 19  }
  0x12   :  { %s4308_s27 = sld [smem:[%s5045_s0 + %s4167_s22]]   ;;  %s4171_s22 = smov 20  }
  0x13   :  { %5064 = sst [smem:[#allocation6_spill]] %s4288_s30 }
  0x14   :  { %s4313_s4 = sld [smem:[%s5045_s0 + %s4168_s28]]   ;;  %s4172_s28 = smov 21  }
  0x15   :  { %5065 = sst [smem:[#allocation7_spill]] %s4293_s6 }
  0x16   :  { %5066 = sst [smem:[#allocation8_spill]] %s4298_s12 }
  0x17   :  { %5067 = sst [smem:[#allocation9_spill]] %s4303_s20 }
  0x18   :  { %5068 = sst [smem:[#allocation10_spill]] %s4308_s27 }
  0x19   :  { %s4318_s12 = sld [smem:[%s5045_s0 + %s4169_s7]]   ;;  %s4173_s7 = smov 22  }
  0x1a   :  { %s4323_s30 = sld [smem:[%s5045_s0 + %s4170_s15]]   ;;  %s4174_s15 = smov 23  }
  0x1b   :  { %s4328_s27 = sld [smem:[%s5045_s0 + %s4171_s22]]   ;;  %s4175_s22 = smov 24  }
  0x1c   :  { %s4333_s20 = sld [smem:[%s5045_s0 + %s4172_s28]]   ;;  %s4176_s28 = smov 25  }
  0x1d   :  { %s4338_s6 = sld [smem:[%s5045_s0 + %s4173_s7]]   ;;  %s4177_s7 = smov 26  }
  0x1f   :  { %5069 = sst [smem:[#allocation11_spill]] %s4318_s12 }
  0x20   :  { %s4343_s12 = sld [smem:[%s5045_s0 + %s4174_s15]]   ;;  %s4178_s15 = smov 27  }
  0x21   :  { %5070 = sst [smem:[#allocation12_spill]] %s4328_s27 }
  0x22   :  { %5071 = sst [smem:[#allocation13_spill]] %s4333_s20 }
  0x23   :  { %5072 = sst [smem:[#allocation14_spill]] %s4338_s6 }
  0x24   :  { %s4348_s27 = sld [smem:[%s5045_s0 + %s4175_s22]]   ;;  %s4179_s22 = smov 28  }
  0x25   :  { %s4353_s20 = sld [smem:[%s5045_s0 + %s4176_s28]]   ;;  %s4180_s28 = smov 29  }
  0x26   :  { %5073 = sst [smem:[#allocation15_spill]] %s4343_s12 }
  0x27   :  { %s4358_s6 = sld [smem:[%s5045_s0 + %s4177_s7]]   ;;  %s4181_s7 = smov 30  }
  0x28   :  { %s4363_s12 = sld [smem:[%s5045_s0 + %s4178_s15]]  }
  0x2a   :  { %5074 = sst [smem:[#allocation16_spill]] %s4348_s27 }
  0x2b   :  { %5075 = sst [smem:[#allocation17_spill]] %s4353_s20 }
  0x2c   :  { %s4368_s27 = sld [smem:[%s5045_s0 + %s4179_s22]]  }
  0x2d   :  { %5076 = sst [smem:[#allocation18_spill]] %s4358_s6 }
  0x2e   :  { %s4373_s20 = sld [smem:[%s5045_s0 + %s4180_s28]]  }
  0x2f   :  { %s4378_s6 = sld [smem:[%s5045_s0 + %s4181_s7]]  }
  0x30   :  { %67 = vsyncpa [#allocation3], 0  ;;  %s4380_s15 = smov 0  }
  0x31 LB: > { %s5077_s3 = sld [smem:[#allocation5_spill]]  ;;  %s4386_s16 = sadd.s32 4294967295, %s4150_s15   ;;  %s4150_s15 = sphi %s4380_s15, %s73_s15  }
  0x32   : > { %p3451_p0 = scmp.ge.s32.totalorder %s4150_s15, 1  ;;  %p774_p1 = scmp.lt.s32.totalorder %s4150_s15, 3 }
  0x33   : > { %s4182_s0 = smov [#allocation2]   ;;  %p5051_p3 = scmp.eq.s32.totalorder %s4386_s16, 0 }
  0x34   : > { %s825_s18 = sshll.u32 %s4182_s0, 4  ;;  %p4390_p2 = pnand %p3451_p0, %p774_p1  ;;  %s826_s18 = int_to_ptr.vmem [resolvable:$true] %s825_s18 }
  0x35   : > { %s4112_s26 = scalar_lea.hbm %s4323_s30, 8192 }
  0x36   : > { %s5078_s22 = scalar_select %p4390_p2, 1, 0 }
  0x37   : > { %p3943_p4 = pneg %p4390_p2  ;;  %p4113_p6 = scmp.ne.s32.totalorder %s4323_s30, %s4112_s26 }
  0x38   : > { %p4119_p10 = scmp.lt.u32.totalorder %s4112_s26, %s4323_s30 }
  0x39   : > { %p4399_p5 = pnand %p5051_p3, %p3943_p4 }
  0x3b   : > { %p4114_p7 = pneg %p4399_p5 }
  0x3d   : > { %p4115_p8 = pnand %p4114_p7, %p4113_p6 }
  0x3f   : > { %p4116_p9 = pneg %p4115_p8 }
  0x41   : > { %p4121_p11 = pnand %p4119_p10, %p4116_p9 }
  0x43   : > { %4124 = shalt.err (!%p4121_p11)
}
  0x44   : > { %s4125_s28 = scalar_lea.vmem %s826_s18, 8192  ;;  %p4133_p1 = scmp.lt.s32.totalorder %s826_s18, %s826_s18 }
  0x45   : > { %p4126_p12 = scmp.ne.s32.totalorder %s826_s18, %s4125_s28  ;;  %p4134_p2 = scmp.lt.s32.totalorder %s4125_s28, %s4125_s28 }
  0x47   : > { %p4128_p13 = pnand %p4126_p12, %p4114_p7  ;;  %p4135_p4 = por %p4134_p2, %p4133_p1 }
  0x49   : > { %p4129_p0 = pneg %p4128_p13 }
  0x4b   : > { %p4136_p3 = pnand %p4135_p4, %p4129_p0 }
  0x4d   : > { %4139 = shalt.err (!%p4136_p3)
}
  0x4e   : > { %s4183_s1 = smov 256   ;;  %s4184_s2 = smov 16  }
  0x4f   : > { %3946 = dma.hbm_to_vmem [thread:$0]  (!%p4399_p5), %s4323_s30, 8192, %s826_s18, [#allocation3], %s4183_s1, %s4183_s1, %s4184_s2  }
  0x50   : > { %p5080_p6 = scmp.ne.s32.totalorder %s5078_s22, 0 }
  0x51   : > { %p5081_p8 = scmp.eq.s32.totalorder (!%p5080_p6), %s4386_s16, 0 }
  0x52   : > { %909 = sbr.rel (%p5080_p6) target bundleno = 1826 (0x722), region = 132 }
  0x59   : > { %4145 = dma.done.wait (%p5081_p8), [#allocation3], 8192   ;;  %p5082_p7 = pmov %p5081_p8 }
  0x5a   : > { %p1016_p2 = scmp.lt.s32.totalorder %s4386_s16, 1  ;;  %v1084_v0 = vlaneseq  ;;  %v4432_v7 = vld [vmem:[%s5077_s3] sm:$0xff]  ;;  %s4185_s0 = smov 9   ;;  %v3473_v24 = vld [vmem:[%s5077_s3 + $0x8] ss:$0 sm:$0xff]  ;;  %vm1503_vm0 = vcmask 72704  }
  0x5b   : > { %4147 = vsyncadd (%p5082_p7), [#allocation3], 4294959104  ;;  %s4186_s18 = smov 2   ;;  %s4187_s23 = smov 8   ;;  %v4476_v28 = vld [vmem:[%s4258_s29] sm:$0xff]  ;;  %v4482_v31 = vld [vmem:[%s4258_s29 + $0x8] sm:$0xff] }
  0x5c   : > { %s5103_s16 = smov (!%p1016_p2, %s4386_s16), 1  ;;  %v1085_v1 = vshrl.u32 %v1084_v0, 7  ;;  %s4188_s26 = smov 1   ;;  %v3468_v48 = vld [vmem:[%s4258_s29 + $0x10] ss:$0 sm:$0xff]  ;;  %v4528_v50 = vld [vmem:[%s4268_s8] sm:$0xff] }
  0x5d   : > { %s4419_s7 = sshll.u32 %s5103_s16, 3  ;;  %s4448_s22 = sshll.u32 %s5103_s16, 4  ;;  %v3469_v49 = vld [vmem:[%s4258_s29 + $0x18] ss:$0 sm:$0xff]  ;;  %vm1505_vm1 = vcmask 596992   ;;  %vm1077_vm2 = vcmask 138240  }
  0x5e   : > { %v4421_v2 = vsub.s32 2, %v1085_v1  ;;  %s1029_s10 = scalar_lea.vmem %s4238_s13, %s4419_s7  ;;  %s1033_s11 = scalar_lea.vmem %s4243_s17, %s4419_s7  ;;  %v4427_v3 = vsub.s32 3, %v1085_v1  ;;  %v4429_v4 = vsub.s32 1, %v1085_v1  ;;  %v4442_v12 = vsub.s32 4, %v1085_v1 }
  0x5f   : > { %v1496_v5 = vld [vmem:[%s1029_s10] sm:$0x3f]  ;;  %v4444_v13 = vsub.s32 5, %v1085_v1  ;;  %v4446_v14 = vsub.s32 0, %v1085_v1  ;;  %v4456_v17 = vsub.s32 7, %v1085_v1  ;;  %v4458_v18 = vsub.s32 6, %v1085_v1  ;;  %s1020_s16 = scalar_lea.vmem %s4228_s5, %s4448_s22  ;;  %s1025_s28 = scalar_lea.vmem %s4233_s9, %s4448_s22 }
  0x60   : > { %v1497_v6 = vld [vmem:[%s1033_s11] sm:$0x3f]  ;;  %v1524_v9 = vrot.slane %v4432_v7, %v4421_v2  ;;  %v1533_v10 = vrot.slane %v4432_v7, %v4427_v3  ;;  %v1515_v11 = vrot.slane %v4432_v7, %v4429_v4  ;;  %v1542_v15 = vrot.slane %v4432_v7, %v4442_v12  ;;  %s5054_s1 = smov 10   ;;  %s4190_s2 = smov 17   ;;  %v1066_v26 = vld [vmem:[%s1020_s16 + $0x8] sm:$0x3f] }
  0x61   : > { %v1498_v8 = vsub.f32 %v1496_v5, %v1497_v6  ;;  %v1551_v16 = vrot.slane %v4432_v7, %v4444_v13  ;;  %v1510_v19 = vrot.slane %v4432_v7, %v4446_v14  ;;  %v1569_v20 = vrot.slane %v4432_v7, %v4456_v17  ;;  %v1065_v22 = vld [vmem:[%s1020_s16] sm:$0x3f]  ;;  %s5052_s10 = smov 16   ;;  %v1068_v27 = vld [vmem:[%s1025_s28 + $0x8] sm:$0x3f]  ;;  %s4192_s11 = smov 18  }
  0x62   : > { %1526 = vrot.lane.b32.xlu1 %v1524_v9, %s4186_s18  ;;  %v1560_v21 = vrot.slane %v4432_v7, %v4458_v18  ;;  %v1067_v23 = vld [vmem:[%s1025_s28] sm:$0x3f]  ;;  %v1070_v29 = vsub.f32 %v1066_v26, %v1068_v27  ;;  %v1097_v30 = vrot.slane %v4476_v28, %v4429_v4  ;;  %v1101_v32 = vrot.slane %v4482_v31, %v4429_v4  ;;  %s1037_s16 = scalar_lea.vmem %s4248_s21, %s4419_s7  ;;  %s1041_s28 = scalar_lea.vmem %s4253_s25, %s4419_s7 }
  0x63   : > { %1500 = vrot.lane.b32.xlu0 %v1498_v8, %s4185_s0  ;;  %v1069_v25 = vsub.f32 %v1065_v22, %v1067_v23  ;;  %v1119_v33 = vrot.slane %v4476_v28, %v4421_v2  ;;  %v1123_v34 = vrot.slane %v4482_v31, %v4421_v2  ;;  %v1141_v35 = vrot.slane %v4476_v28, %v4427_v3  ;;  %v1699_v44 = vld [vmem:[%s1037_s16] sm:$0x3f]  ;;  %s4198_s16 = smov 6   ;;  %s5097_s3 = smov 120  }
  0x64   : > { %v1145_v36 = vrot.slane %v4482_v31, %v4427_v3  ;;  %v1184_v37 = vrot.slane %v4476_v28, %v4444_v13  ;;  %v1188_v38 = vrot.slane %v4482_v31, %v4444_v13  ;;  %v1163_v39 = vrot.slane %v4476_v28, %v4442_v12  ;;  %v1700_v45 = vld [vmem:[%s1041_s28] sm:$0x3f]  ;;  %s4203_s28 = smov 126  }
  0x65   : > { %v1167_v40 = vrot.slane %v4482_v31, %v4442_v12  ;;  %v1206_v41 = vrot.slane %v4476_v28, %v4458_v18  ;;  %v1210_v42 = vrot.slane %v4482_v31, %v4458_v18  ;;  %v1228_v43 = vrot.slane %v4476_v28, %v4456_v17 }
  0x66   : > { %1535 = vrot.lane.b32.xlu1 %v1533_v10, %s4187_s23  ;;  %v1232_v46 = vrot.slane %v4482_v31, %v4456_v17  ;;  %v1701_v47 = vsub.f32 %v1699_v44, %v1700_v45  ;;  %v1718_v51 = vrot.slane %v4528_v50, %v4429_v4  ;;  %v1727_v52 = vrot.slane %v4528_v50, %v4421_v2 }
  0x67   : > { %1517 = vrot.lane.b32.xlu0 %v1515_v11, %s4188_s26  ;;  %v1736_v53 = vrot.slane %v4528_v50, %v4427_v3  ;;  %v1754_v54 = vrot.slane %v4528_v50, %v4444_v13  ;;  %v1091_v55 = vrot.slane %v4482_v31, %v4446_v14  ;;  %v1087_v56 = vrot.slane %v4476_v28, %v4446_v14 }
  0x68   : > { %v1745_v57 = vrot.slane %v4528_v50, %v4442_v12  ;;  %v1763_v58 = vrot.slane %v4528_v50, %v4458_v18  ;;  %v4199_v2 = vmov 0.0|0.0   ;;  %vm4206_vm3 = vmmov 0  }
  0x69   : > { %3725 = vmatprep.subr.bf16.mxu1 %v4199_v2  ;;  %vm1108_vm4 = vcmask 7168   ;;  %vm1130_vm5 = vcmask 15360   ;;  %vm1152_vm6 = vcmask 130048   ;;  %vm1195_vm7 = vcmask 146432  }
  0x6a   : > { %1544 = vrot.lane.b32.xlu1 %v1542_v15, %s4185_s0  ;;  %vm1217_vm8 = vcmask 261120   ;;  %vm1239_vm9 = vcmask 269312   ;;  %vm1261_vm10 = vcmask 277504   ;;  %vm1706_vm11 = vcmask 39936  }
  0x6b   : > { %1553 = vrot.lane.b32.xlu0 %v1551_v16, %s5054_s1  ;;  %s4196_s1 = smov 34   ;;  %vm1708_vm12 = vcmask 171008   ;;  %vm1397_vm13 = vcmask 1045504   ;;  %vm1400_vm14 = vcmask 1043456   ;;  %vm1403_vm15 = vcmask 1041408  }
  0x6e   : > { %1571 = vrot.lane.b32.xlu1 %v1569_v20, %s4190_s2  ;;  %v4204_v20 = vmov 0.0  }
  0x6f   : > { %1562 = vrot.lane.b32.xlu0 %v1560_v21, %s5052_s10  ;;  %1489 = vmatprep.mubr.f32.mxu0 %v4204_v20 }
  0x70   : > { %3608 = vmatprep.mubr.msk.f32.mxu1 %vm4206_vm3, %v4204_v20 }
  0x72   : > { %1073 = vrot.lane.b32.xlu1 %v1069_v25, %s4190_s2 }
  0x73   : > { %1580 = vrot.lane.b32.xlu0 %v3473_v24, %s4192_s11 }
  0x76   : > { %1104 = vrot.lane.b32.xlu1 %v1097_v30, %s4188_s26 }
  0x77   : > { %1075 = vrot.lane.b32.xlu0 %v1070_v29, %s4190_s2 }
  0x7a   : > { %1126 = vrot.lane.b32.xlu1 %v1119_v33, %s4186_s18 }
  0x7b   : > { %1106 = vrot.lane.b32.xlu0 %v1101_v32, %s4188_s26 }
  0x7e   : > { %1148 = vrot.lane.b32.xlu1 %v1141_v35, %s5052_s10  ;;  %v3476_v35 = vld [vmem:[%s4268_s8 + $0x8] ss:$0 sm:$0xff] }
  0x7f   : > { %1128 = vrot.lane.b32.xlu0 %v1123_v34, %s4186_s18 }
  0x82   : > { %1191 = vrot.lane.b32.xlu1 %v1184_v37, %s4192_s11 }
  0x83   : > { %1150 = vrot.lane.b32.xlu0 %v1145_v36, %s5052_s10  ;;  %s5055_s10 = smov 32  }
  0x86   : > { %1170 = vrot.lane.b32.xlu1 %v1163_v39, %s4190_s2 }
  0x87   : > { %1193 = vrot.lane.b32.xlu0 %v1188_v38, %s4192_s11  ;;  %s4194_s11 = smov 33  }
  0x8a   : > { %1213 = vrot.lane.b32.xlu1 %v1206_v41, %s5055_s10 }
  0x8b   : > { %1172 = vrot.lane.b32.xlu0 %v1167_v40, %s4190_s2  ;;  %s4195_s2 = smov 5  }
  0x8e   : > { %1235 = vrot.lane.b32.xlu1 %v1228_v43, %s4194_s11 }
  0x8f   : > { %1215 = vrot.lane.b32.xlu0 %v1210_v42, %s5055_s10  ;;  %s4212_s10 = smov 94  }
  0x92   : > { %1703 = vrot.lane.b32.xlu1 %v1701_v47, %s4195_s2 }
  0x93   : > { %1237 = vrot.lane.b32.xlu0 %v1232_v46, %s4194_s11  ;;  %s4205_s11 = smov 118  }
  0x96   : > { %1259 = vrot.lane.b32.xlu1 %v3469_v49, %s4196_s1 }
  0x97   : > { %1257 = vrot.lane.b32.xlu0 %v3468_v48, %s4196_s1  ;;  %s4197_s1 = smov 4  }
  0x9a   : > { %1729 = vrot.lane.b32.xlu1 %v1727_v52, %s4186_s18  ;;  %s4200_s18 = smov 127  }
  0x9b   : > { %1720 = vrot.lane.b32.xlu0 %v1718_v51, %s4188_s26  ;;  %s5057_s26 = smov 120  }
  0x9e   : > { %1756 = vrot.lane.b32.xlu1 %v1754_v54, %s4198_s16  ;;  %s5083_s16 = smov 10  }
  0x9f   : > { %1738 = vrot.lane.b32.xlu0 %v1736_v53, %s4197_s1  ;;  %s4209_s1 = smov 110  }
  0xa2   : > { %1747 = vrot.lane.b32.xlu1 %v1745_v57, %s4195_s2  ;;  %s5059_s2 = smov 112  }
  0xa3   : > { %1765 = vrot.lane.b32.xlu0 %v1763_v58, %s4187_s23  ;;  %s4201_s23 = smov 119  }
  0xd4   : > { %v1527_v60 = vpop.permute.xlu1 %1526 }
  0xd5   : > { %v1501_v59 = vpop.permute.xlu0 %1500 }
  0xd6   : > { %v1504_v61 = vsel %vm1503_vm0, 0.0, %v1501_v59  ;;  %vm1417_vm0 = vcmask 441344  }
  0xd7   : > { %v1506_v62 = vsel %vm1505_vm1, %v1504_v61, 0.0  ;;  %vm1281_vm1 = vcmask 1039360  }
  0xd8   : > { %v4552_v63 = vmul.f32 %v1510_v19, %v1506_v62  ;;  %v1536_v0 = vpop.permute.xlu1 %1535  ;;  %v1529_v9 = vmul.f32 %v1527_v60, %v1506_v62  ;;  %v1772_v19 = vrot.slane %v4528_v50, %v4456_v17 }
  0xd9   : > { %v1518_v1 = vpop.permute.xlu0 %1517  ;;  %v1538_v4 = vmul.f32 %v1536_v0, %v1506_v62 }
  0xda   : > { %v1520_v3 = vmul.f32 %v1518_v1, %v1506_v62  ;;  %v1590_v15 = vrot.slane %v1529_v9, 4 }
  0xdb   : > { %v1595_v11 = vrot.slane %v1538_v4, 6 }
  0xdc   : > { %v1585_v5 = vrot.slane %v1520_v3, 2  ;;  %v1545_v6 = vpop.permute.xlu1 %1544 }
  0xdd   : > { %v1554_v8 = vpop.permute.xlu0 %1553  ;;  %v1547_v10 = vmul.f32 %v1545_v6, %v1506_v62 }
  0xde   : > { %1586 = vrot.lane.b32.xlu0 %v1585_v5, %s4200_s18  ;;  %v1556_v12 = vmul.f32 %v1554_v8, %v1506_v62 }
  0xdf   : > { %1600 = vrot.lane.b32.xlu1 %v1547_v10, %s4201_s23 }
  0xe0   : > { %v1572_v7 = vpop.permute.xlu1 %1571  ;;  %v1604_v16 = vrot.slane %v1556_v12, 2 }
  0xe1   : > { %v1563_v13 = vpop.permute.xlu0 %1562  ;;  %v1574_v23 = vmul.f32 %v1572_v7, %v1506_v62 }
  0xe2   : > { %1596 = vrot.lane.b32.xlu0 %v1595_v11, %s5057_s26  ;;  %v1565_v18 = vmul.f32 %v1563_v13, %v1506_v62 }
  0xe3   : > { %1591 = vrot.lane.b32.xlu1 %v1590_v15, %s4203_s28  ;;  %v1614_v28 = vrot.slane %v1574_v23, 6 }
  0xe4   : > { %v1074_v22 = vpop.permute.xlu1 %1073  ;;  %v1609_v17 = vrot.slane %v1565_v18, 4 }
  0xe5   : > { %v1581_v21 = vpop.permute.xlu0 %1580  ;;  %v4564_v24 = vsel %vm1077_vm2, 0.0, %v1074_v22 }
  0xe6   : > { %1605 = vrot.lane.b32.xlu0 %v1604_v16, %s4205_s11  ;;  %v4569_v25 = vmul.f32 %v1087_v56, %v4564_v24  ;;  %v1583_v33 = vmul.f32 %v1581_v21, %v1506_v62 }
  0xe7   : > { %1774 = vrot.lane.b32.xlu1 %v1772_v19, %s4185_s0  ;;  %s4208_s0 = smov 111  }
  0xe8   : > { %v1105_v27 = vpop.permute.xlu1 %1104 }
  0xe9   : > { %v1076_v26 = vpop.permute.xlu0 %1075  ;;  %v1113_v31 = vmul.f32 %v1105_v27, %v4564_v24 }
  0xea   : > { %v4573_v29 = vsel %vm1077_vm2, %v1074_v22, %v1076_v26  ;;  %1610 = vrot.lane.b32.xlu0 %v1609_v17, %s5059_s2  ;;  %v4577_v30 = vsel %vm1077_vm2, %v1076_v26, 0.0 }
  0xeb   : > { %v4583_v32 = vmul.f32 %v1091_v55, %v4573_v29  ;;  %1615 = vrot.lane.b32.xlu1 %v1614_v28, %s4208_s0  ;;  %v1272_v49 = vrot.slane %v1113_v31, 2 }
  0xec   : > { %v1127_v36 = vpop.permute.xlu1 %1126 }
  0xed   : > { %v1107_v34 = vpop.permute.xlu0 %1106  ;;  %v1135_v51 = vmul.f32 %v1127_v36, %v4564_v24 }
  0xee   : > { %v1115_v37 = vmul.f32 %v1107_v34, %v4577_v30  ;;  %v1109_v38 = vsel %vm1108_vm4, %v1105_v27, %v1107_v34  ;;  %1619 = vrot.lane.b32.xlu0 %v1583_v33, %s4209_s1  ;;  %vm1315_vm4 = vcmask 916480  }
  0xef   : > { %v1114_v39 = vmul.f32 %v1109_v38, %v4573_v29  ;;  %1783 = vrot.lane.b32.xlu1 %v3476_v35, %s5083_s16  ;;  %v1289_v60 = vrot.slane %v1135_v51, 4  ;;  %s5060_s16 = smov 96  }
  0xf0   : > { %v1274_v40 = vrot.slane %v1115_v37, 2  ;;  %v1149_v43 = vpop.permute.xlu1 %1148 }
  0xf1   : > { %v1273_v41 = vrot.slane %v1114_v39, 2  ;;  %v1129_v42 = vpop.permute.xlu0 %1128  ;;  %v1157_v7 = vmul.f32 %v1149_v43, %v4564_v24 }
  0xf2   : > { %v1137_v44 = vmul.f32 %v1129_v42, %v4577_v30  ;;  %v1131_v45 = vsel %vm1130_vm5, %v1127_v36, %v1129_v42 }
  0xf3   : > { %v1136_v46 = vmul.f32 %v1131_v45, %v4573_v29  ;;  %v4025_v47 = vpack.i.bf16 %v1274_v40, %v1273_v41  ;;  %v1306_v17 = vrot.slane %v1157_v7, 6 }
  0xf4   : > { %v1291_v48 = vrot.slane %v1137_v44, 4  ;;  %v1192_v54 = vpop.permute.xlu1 %1191 }
  0xf5   : > { %v1290_v52 = vrot.slane %v1136_v46, 4  ;;  %v1151_v53 = vpop.permute.xlu0 %1150  ;;  %4026 = vrot.lane.b32.xlu0 %v4025_v47, %s4200_s18  ;;  %v1200_v26 = vmul.f32 %v1192_v54, %v4564_v24 }
  0xf6   : > { %v1159_v55 = vmul.f32 %v1151_v53, %v4577_v30  ;;  %v1153_v56 = vsel %vm1152_vm6, %v1149_v43, %v1151_v53 }
  0xf7   : > { %v1158_v57 = vmul.f32 %v1153_v56, %v4573_v29  ;;  %v4030_v58 = vpack.i.bf16 %v1291_v48, %v1290_v52  ;;  %v1337_v39 = vrot.slane %v1200_v26, 2 }
  0xf8   : > { %v1308_v59 = vrot.slane %v1159_v55, 6  ;;  %v1171_v0 = vpop.permute.xlu1 %1170 }
  0xf9   : > { %v1307_v61 = vrot.slane %v1158_v57, 6  ;;  %v1194_v62 = vpop.permute.xlu0 %1193  ;;  %1275 = vrot.lane.b32.xlu0 %v1272_v49, %s4200_s18  ;;  %4031 = vrot.lane.b32.xlu1 %v4030_v58, %s4203_s28  ;;  %v1178_v16 = vmul.f32 %v1171_v0, %v4564_v24 }
  0xfa   : > { %v1202_v1 = vmul.f32 %v1194_v62, %v4577_v30  ;;  %v1196_v3 = vsel %vm1195_vm7, %v1192_v54, %v1194_v62  ;;  %vm1346_vm7 = vcmask 900096  }
  0xfb   : > { %v1201_v4 = vmul.f32 %v1196_v3, %v4573_v29  ;;  %v4035_v5 = vpack.i.bf16 %v1308_v59, %v1307_v61 }
  0xfc   : > { %v1339_v6 = vrot.slane %v1202_v1, 2  ;;  %v1214_v10 = vpop.permute.xlu1 %1213 }
  0xfd   : > { %v1338_v8 = vrot.slane %v1201_v4, 2  ;;  %v1173_v9 = vpop.permute.xlu0 %1172  ;;  %1292 = vrot.lane.b32.xlu1 %v1289_v60, %s4203_s28  ;;  %4036 = vrot.lane.b32.xlu0 %v4035_v5, %s5059_s2  ;;  %v1222_v33 = vmul.f32 %v1214_v10, %v4564_v24  ;;  %v4213_v5 = vmov 0  }
  0xfe   : > { %v1180_v11 = vmul.f32 %v1173_v9, %v4577_v30  ;;  %v1174_v12 = vsel %vm1077_vm2, %v1171_v0, %v1173_v9  ;;  %4060 = vset.pattern.permute.xlu1 %v4213_v5  ;;  %4111 = vset.pattern.permute.xlu0 %v4213_v5  ;;  %vm1298_vm2 = vcmask 1031168  }
  0xff   : > { %v1179_v13 = vmul.f32 %v1174_v12, %v4573_v29  ;;  %v4045_v15 = vpack.i.bf16 %v1339_v6, %v1338_v8  ;;  %v1354_v42 = vrot.slane %v1222_v33, 4 }
 0x100   : > { %v1236_v21 = vpop.permute.xlu1 %1235 }
 0x101   : > { %v1216_v18 = vpop.permute.xlu0 %1215  ;;  %4046 = vrot.lane.b32.xlu0 %v4045_v15, %s4209_s1  ;;  %v4040_v19 = vpack.i.bf16 %v1180_v11, %v1179_v13  ;;  %v1244_v47 = vmul.f32 %v1236_v21, %v4564_v24 }
 0x102   : > { %v1224_v22 = vmul.f32 %v1216_v18, %v4577_v30  ;;  %v1218_v23 = vsel %vm1217_vm8, %v1214_v10, %v1216_v18 }
 0x103   : > { %4041 = vrot.lane.b32.xlu1 %v4040_v19, %s4208_s0  ;;  %v1223_v27 = vmul.f32 %v1218_v23, %v4573_v29  ;;  %v1371_v55 = vrot.slane %v1244_v47, 6 }
 0x104   : > { %v1356_v28 = vrot.slane %v1224_v22, 4  ;;  %v1704_v36 = vpop.permute.xlu1 %1703 }
 0x105   : > { %v1355_v34 = vrot.slane %v1223_v27, 4  ;;  %v1238_v35 = vpop.permute.xlu0 %1237  ;;  %1323 = vrot.lane.b32.xlu0 %v1178_v16, %s4208_s0  ;;  %v1707_v48 = vsel %vm1706_vm11, 0.0, %v1704_v36  ;;  %s4211_s0 = smov 95   ;;  %vm1380_vm11 = vcmask 777216  }
 0x106   : > { %v1246_v37 = vmul.f32 %v1238_v35, %v4577_v30  ;;  %v1240_v38 = vsel %vm1239_vm9, %v1236_v21, %v1238_v35  ;;  %v4627_v53 = vsel %vm1708_vm12, %v1707_v48, 0.0  ;;  %v1056_v35 = vld [vmem:[%s4278_s19] sm:$0x3]  ;;  %vm1329_vm9 = vcmask 908288  }
 0x107   : > { %1309 = vrot.lane.b32.xlu1 %v1306_v17, %s5059_s2  ;;  %v1245_v40 = vmul.f32 %v1240_v38, %v4573_v29  ;;  %v4050_v31 = vpack.i.bf16 %v1356_v28, %v1355_v34  ;;  %vm1394_vm12 = vcmask 769024  }
 0x108   : > { %v1373_v41 = vrot.slane %v1246_v37, 6  ;;  %v1260_v45 = vpop.permute.xlu1 %1259 }
 0x109   : > { %v1372_v43 = vrot.slane %v1245_v40, 6  ;;  %4051 = vrot.lane.b32.xlu0 %v4050_v31, %s5060_s16  ;;  %v1258_v44 = vpop.permute.xlu0 %1257  ;;  %v1268_v60 = vmul.f32 %v1260_v45, %v4577_v30 }
 0x10a   : > { %v1262_v46 = vsel %vm1261_vm10, %v1258_v44, %v1260_v45  ;;  %v1266_v56 = vmul.f32 %v1258_v44, %v4564_v24  ;;  %vm1363_vm10 = vcmask 785408  }
 0x10b   : > { %1340 = vrot.lane.b32.xlu1 %v1337_v39, %s4209_s1  ;;  %v4055_v49 = vpack.i.bf16 %v1373_v41, %v1372_v43  ;;  %v1267_v51 = vmul.f32 %v1262_v46, %v4573_v29  ;;  %s4214_s1 = smov 123   ;;  %v4655_v39 = vld [vmem:[%s4273_s14] sm:$0x3] }
 0x10c   : > { %v1730_v52 = vpop.permute.xlu1 %1729 }
 0x10d   : > { %1357 = vrot.lane.b32.xlu0 %v1354_v42, %s5060_s16  ;;  %v1721_v54 = vpop.permute.xlu0 %1720  ;;  %v1732_v57 = vmul.f32 %v1730_v52, %v4627_v53  ;;  %s5093_s16 = sld [smem:[#allocation17_spill]] }
 0x10e   : > { %v1723_v29 = vmul.f32 %v1721_v54, %v4627_v53 }
 0x10f   : > { %4056 = vrot.lane.b32.xlu1 %v4055_v49, %s4211_s0  ;;  %v1793_v61 = vrot.slane %v1732_v57, 4 }
 0x110   : > { %v1757_v58 = vpop.permute.xlu1 %1756  ;;  %v1788_v1 = vrot.slane %v1723_v29, 2 }
 0x111   : > { %1390 = vrot.lane.b32.xlu0 %v1267_v51, %s4212_s10  ;;  %v1739_v59 = vpop.permute.xlu0 %1738  ;;  %v1759_v6 = vmul.f32 %v1757_v58, %v4627_v53 }
 0x112   : > { %v1741_v3 = vmul.f32 %v1739_v59, %v4627_v53 }
 0x113   : > { %1374 = vrot.lane.b32.xlu1 %v1371_v55, %s4211_s0  ;;  %v1807_v9 = vrot.slane %v1759_v6, 2  ;;  %s5086_s0 = sld [smem:[#allocation12_spill]] }
 0x114   : > { %v1748_v62 = vpop.permute.xlu1 %1747  ;;  %v1798_v30 = vrot.slane %v1741_v3, 6 }
 0x115   : > { %1388 = vrot.lane.b32.xlu0 %v1266_v56, %s4212_s10  ;;  %v1766_v0 = vpop.permute.xlu0 %1765  ;;  %v1750_v24 = vmul.f32 %v1748_v62, %v4627_v53 }
 0x116   : > { %v1768_v4 = vmul.f32 %v1766_v0, %v4627_v53 }
 0x117   : > { %1392 = vrot.lane.b32.xlu1 %v1268_v60, %s4212_s10  ;;  %s4215_s10 = smov 124  }
 0x118   : > { %v1812_v8 = vrot.slane %v1768_v4, 4 }
 0x119   : > { %1794 = vrot.lane.b32.xlu0 %v1793_v61, %s4203_s28  ;;  %s4216_s28 = smov 122  }
 0x11b   : > { %1789 = vrot.lane.b32.xlu1 %v1788_v1, %s4200_s18 }
 0x11d   : > { %1803 = vrot.lane.b32.xlu0 %v1750_v24, %s4214_s1  ;;  %s4217_s1 = smov 64  }
 0x11f   : > { %1799 = vrot.lane.b32.xlu1 %v1798_v30, %s4215_s10  ;;  %s5087_s10 = smov 16  }
 0x121   : > { %1813 = vrot.lane.b32.xlu0 %v1812_v8, %s5057_s26  ;;  %s5089_s26 = sld [smem:[#allocation9_spill]] }
 0x123   : > { %1808 = vrot.lane.b32.xlu1 %v1807_v9, %s4216_s28  ;;  %s5088_s28 = smov 32  }
 0x150   : > { %v1587_v10 = vpop.permute.xlu0 %1586 }
 0x151   : > { %v1601_v11 = vpop.permute.xlu1 %1600  ;;  %v1621_v13 = vsel %vm1397_vm13, %v4552_v63, %v1587_v10 }
 0x154   : > { %v1597_v12 = vpop.permute.xlu0 %1596 }
 0x155   : > { %v1592_v7 = vpop.permute.xlu1 %1591 }
 0x156   : > { %v1622_v15 = vsel %vm1400_vm14, %v1587_v10, %v1592_v7  ;;  %v1623_v22 = vsel %vm1403_vm15, %v1592_v7, %v1597_v12 }
 0x157   : > { %v3726_v18 = vpack.c.bf16 %v1622_v15, %v1621_v13 }
 0x158   : > { %v1606_v16 = vpop.permute.xlu0 %1605 }
 0x159   : > { %v1624_v19 = vsel %vm1397_vm13, %v1601_v11, %v1606_v16  ;;  %3727 = vmatpush3.bf16.msra.mxu1 %v3726_v18  ;;  %v1775_v21 = vpop.permute.xlu1 %1774 }
 0x15a   : > { %v1777_v23 = vmul.f32 %v1775_v21, %v4627_v53  ;;  %3728 = vmatprep.subr.bf16.mxu1 %v4199_v2  ;;  %v3729_v17 = vpack.c.bf16 %v1624_v19, %v1623_v22 }
 0x15c   : > { %v1611_v26 = vpop.permute.xlu0 %1610  ;;  %v1817_v63 = vrot.slane %v1777_v23, 6 }
 0x15d   : > { %3730 = vmatpush3.bf16.msra.mxu1 %v3729_v17  ;;  %v1616_v27 = vpop.permute.xlu1 %1615  ;;  %v1625_v28 = vsel %vm1400_vm14, %v1606_v16, %v1611_v26 }
 0x15e   : > { %v1626_v33 = vsel %vm1403_vm15, %v1611_v26, %v1616_v27  ;;  %1818 = vrot.lane.b32.xlu1 %v1817_v63, %s4201_s23  ;;  %3731 = vmatprep.subr.bf16.mxu1 %v4199_v2  ;;  %s5084_s23 = sld [smem:[#allocation11_spill]] }
 0x15f   : > { %v3732_v34 = vpack.c.bf16 %v1626_v33, %v1625_v28 }
 0x160   : > { %v1620_v37 = vpop.permute.xlu0 %1619 }
 0x161   : > { %3733 = vmatpush3.bf16.msra.mxu1 %v3732_v34  ;;  %v1784_v36 = vpop.permute.xlu1 %1783 }
 0x162   : > { %v1786_v38 = vmul.f32 %v1784_v36, %v4627_v53  ;;  %3606 = vmatprep.subr.mxu1 %v4204_v20  ;;  %1414 = vperm.xlu1 %4060, %v1056_v35  }
 0x164   : > { %1822 = vrot.lane.b32.xlu0 %v1786_v38, %s4205_s11  ;;  %s5085_s11 = sld [smem:[#allocation7_spill]] }
 0x165   : > { %3607 = vmatpush3.msk.msra.mxu1 %vm1397_vm13, %v1620_v37 }
 0x166   : > { %3609 = vmatmul.mubr.msk.f32.vlgmr.msra.gmra.mrb[0].mxu1 %vm1417_vm0, %v4655_v39  ;;  %3628 = vmatprep.subr.mxu1 %v4204_v20 }
 0x167   : > { %v4027_v40 = vpop.permute.xlu0 %4026  ;;  %3630 = vmatprep.mubr.msk.f32.mxu1 %vm4206_vm3, %v4204_v20 }
 0x168   : > { %v4029_v31 = vunpack.i.h.bf16 %v4027_v40  ;;  %v4028_v41 = vunpack.i.l.bf16 %v4027_v40 }
 0x16a   : > { %v1283_v46 = vsel %vm1281_vm1, %v4028_v41, %v4029_v31 }
 0x16b   : > { %v1276_v42 = vpop.permute.xlu0 %1275  ;;  %v4032_v43 = vpop.permute.xlu1 %4031  ;;  %v1399_v52 = vsel %vm1397_vm13, %v4583_v32, %v1283_v46 }
 0x16c   : > { %v4034_v44 = vunpack.i.h.bf16 %v4032_v43  ;;  %v4033_v45 = vunpack.i.l.bf16 %v4032_v43  ;;  %v1282_v47 = vsel %vm1281_vm1, %v1276_v42, %v4028_v41  ;;  %v1713_v43 = vrot.slane %v4528_v50, %v4446_v14 }
 0x16d   : > { %v1398_v59 = vsel %vm1397_vm13, %v4569_v25, %v1282_v47 }
 0x16e   : > { %v1300_v48 = vsel %vm1298_vm2, %v4033_v45, %v4034_v44 }
 0x16f   : > { %v1293_v49 = vpop.permute.xlu1 %1292  ;;  %v4037_v51 = vpop.permute.xlu0 %4036  ;;  %v1402_v54 = vsel %vm1400_vm14, %v1283_v46, %v1300_v48 }
 0x170   : > { %v1299_v55 = vsel %vm1298_vm2, %v1293_v49, %v4033_v45  ;;  %v4039_v56 = vunpack.i.h.bf16 %v4037_v51  ;;  %v4038_v57 = vunpack.i.l.bf16 %v4037_v51  ;;  %v3713_v58 = vpack.c.bf16 %v1402_v54, %v1399_v52 }
 0x171   : > { %v1401_v60 = vsel %vm1400_vm14, %v1282_v47, %v1299_v55 }
 0x172   : > { %3714 = vmatprep.subr.bf16.mxu0 %v3713_v58  ;;  %v3715_v29 = vpack.c.bf16 %v1401_v60, %v1398_v59  ;;  %v1317_v62 = vsel %vm1315_vm4, %v4038_v57, %v4039_v56 }
 0x173   : > { %v4047_v61 = vpop.permute.xlu0 %4046  ;;  %v1405_v25 = vsel %vm1403_vm15, %v1300_v48, %v1317_v62  ;;  %v1714_v48 = vmul.f32 %v1713_v43, %v4627_v53 }
 0x174   : > { %3716 = vmatpush1.bf16.msra.mxu0 %v3715_v29  ;;  %v4049_v32 = vunpack.i.h.bf16 %v4047_v61  ;;  %v4048_v0 = vunpack.i.l.bf16 %v4047_v61 }
 0x175   : > { %v4042_v1 = vpop.permute.xlu1 %4041 }
 0x176   : > { %v4044_v3 = vunpack.i.h.bf16 %v4042_v1  ;;  %v4043_v24 = vunpack.i.l.bf16 %v4042_v1  ;;  %v1348_v4 = vsel %vm1346_vm7, %v4048_v0, %v4049_v32 }
 0x177   : > { %v1324_v5 = vpop.permute.xlu0 %1323 }
 0x178   : > { %v1331_v30 = vsel %vm1329_vm9, %v4043_v24, %v4044_v3  ;;  %v1330_v12 = vsel %vm1329_vm9, %v1324_v5, %v4043_v24  ;;  %v1902_v3 = vld [vmem:[%s4283_s24] sm:$0xff] }
 0x179   : > { %v1310_v6 = vpop.permute.xlu1 %1309  ;;  %v1407_v8 = vsel %vm1397_vm13, %v1331_v30, %v1348_v4 }
 0x17a   : > { %v1316_v9 = vsel %vm1315_vm4, %v1310_v6, %v4038_v57  ;;  %v3717_v10 = vpack.c.bf16 %v1407_v8, %v1405_v25  ;;  %v1905_v6 = vld [vmem:[%s4313_s4 + $0x8] sm:$0xff]  ;;  %v1907_v8 = vld [vmem:[%s4313_s4 + $0x18] sm:$0xff] }
 0x17b   : > { %v4052_v11 = vpop.permute.xlu0 %4051  ;;  %v1404_v15 = vsel %vm1403_vm15, %v1299_v55, %v1316_v9  ;;  %v1904_v9 = vld [vmem:[%s4313_s4] sm:$0xff] }
 0x17c   : > { %v4054_v7 = vunpack.i.h.bf16 %v4052_v11  ;;  %v4053_v13 = vunpack.i.l.bf16 %v4052_v11  ;;  %3718 = vmatprep.subr.bf16.mxu0 %v3717_v10  ;;  %v3743_v10 = vpack.c.bf16 %v1907_v8, %v1905_v6  ;;  %v1906_v11 = vld [vmem:[%s4313_s4 + $0x10] sm:$0xff] }
 0x17d   : > { %v1341_v16 = vpop.permute.xlu1 %1340 }
 0x17e   : > { %v1347_v18 = vsel %vm1346_vm7, %v1341_v16, %v4048_v0  ;;  %v1365_v23 = vsel %vm1363_vm10, %v4053_v13, %v4054_v7  ;;  %v1911_v7 = vld [vmem:[%s4313_s4 + $0x38] sm:$0xff]  ;;  %v1908_v16 = vld [vmem:[%s4313_s4 + $0x20] sm:$0xff] }
 0x17f   : > { %v1406_v19 = vsel %vm1397_vm13, %v1330_v12, %v1347_v18  ;;  %v1358_v21 = vpop.permute.xlu0 %1357  ;;  %v1409_v33 = vsel %vm1400_vm14, %v1348_v4, %v1365_v23  ;;  %v1909_v12 = vld [vmem:[%s4313_s4 + $0x28] sm:$0xff] }
 0x180   : > { %v3719_v22 = vpack.c.bf16 %v1406_v19, %v1404_v15  ;;  %v1364_v26 = vsel %vm1363_vm10, %v1358_v21, %v4053_v13  ;;  %v3745_v13 = vpack.c.bf16 %v1906_v11, %v1904_v9  ;;  %v3747_v15 = vpack.c.bf16 %v1911_v7, %v1909_v12  ;;  %v1913_v19 = vld [vmem:[%s4313_s4 + $0x48] sm:$0xff]  ;;  %v1915_v21 = vld [vmem:[%s4313_s4 + $0x58] sm:$0xff]  ;;  %v1928_v9 = vld [vmem:[%s4313_s4 + $0xc0] sm:$0xff] }
 0x181   : > { %v4057_v17 = vpop.permute.xlu1 %4056  ;;  %v1408_v35 = vsel %vm1400_vm14, %v1347_v18, %v1364_v26  ;;  %v1910_v18 = vld [vmem:[%s4313_s4 + $0x30] sm:$0xff]  ;;  %v1933_v11 = vld [vmem:[%s4313_s4 + $0xe8] sm:$0xff]  ;;  %v1935_v12 = vld [vmem:[%s4313_s4 + $0xf8] sm:$0xff] }
 0x182   : > { %v4059_v63 = vunpack.i.h.bf16 %v4057_v17  ;;  %v4058_v27 = vunpack.i.l.bf16 %v4057_v17  ;;  %3720 = vmatpush1.bf16.msra.mxu0 %v3719_v22  ;;  %v3749_v22 = vpack.c.bf16 %v1910_v18, %v1908_v16  ;;  %v2136_v17 = vld [vmem:[%s5084_s23] sm:$0xff]  ;;  %v1934_v18 = vld [vmem:[%s4313_s4 + $0xf0] sm:$0xff] }
 0x183   : > { %v1391_v28 = vpop.permute.xlu0 %1390  ;;  %v1932_v16 = vld [vmem:[%s4313_s4 + $0xe0] sm:$0xff] }
 0x184   : > { %v1382_v34 = vsel %vm1380_vm11, %v4058_v27, %v4059_v63 }
 0x185   : > { %v1375_v36 = vpop.permute.xlu1 %1374  ;;  %v1411_v37 = vsel %vm1403_vm15, %v1365_v23, %v1382_v34  ;;  %v3751_v23 = vpack.c.bf16 %v1915_v21, %v1913_v19  ;;  %v1937_v19 = vld [vmem:[%s4313_s4 + $0x108] sm:$0xff]  ;;  %v1939_v21 = vld [vmem:[%s4313_s4 + $0x118] sm:$0xff] }
 0x186   : > { %v1381_v38 = vsel %vm1380_vm11, %v1375_v36, %v4058_v27  ;;  %v3721_v40 = vpack.c.bf16 %v1411_v37, %v1409_v33  ;;  %v2134_v33 = vld [vmem:[%s5085_s11] sm:$0xff]  ;;  %v2139_v36 = vld [vmem:[%s5084_s23 + $0x18] sm:$0xff]  ;;  %s4218_s11 = smov 48  }
 0x187   : > { %v1410_v31 = vsel %vm1403_vm15, %v1364_v26, %v1381_v38  ;;  %v1389_v41 = vpop.permute.xlu0 %1388  ;;  %v2137_v26 = vld [vmem:[%s5084_s23 + $0x8] sm:$0xff]  ;;  %v2140_v38 = vld [vmem:[%s5084_s23 + $0x20] sm:$0xff] }
 0x188   : > { %3722 = vmatprep.subr.bf16.mxu0 %v3721_v40  ;;  %v3723_v42 = vpack.c.bf16 %v1410_v31, %v1408_v35  ;;  %v1395_v46 = vsel %vm1394_vm12, %v1389_v41, %v1391_v28  ;;  %v3808_v34 = vpack.c.bf16 %v2137_v26, %v2136_v17  ;;  %v2138_v35 = vld [vmem:[%s5084_s23 + $0x10] sm:$0xff]  ;;  %v2141_v40 = vld [vmem:[%s5084_s23 + $0x28] sm:$0xff]  ;;  %v1936_v17 = vld [vmem:[%s4313_s4 + $0x100] sm:$0xff] }
 0x189   : > { %v1393_v44 = vpop.permute.xlu1 %1392  ;;  %v3811_v37 = vpack.c.bf16 %v2139_v36, %v2138_v35  ;;  %v3814_v31 = vpack.c.bf16 %v2141_v40, %v2140_v38  ;;  %v2142_v41 = vld [vmem:[%s5084_s23 + $0x30] sm:$0xff]  ;;  %v1940_v35 = vld [vmem:[%s4313_s4 + $0x120] sm:$0xff]  ;;  %v1947_v38 = vld [vmem:[%s4313_s4 + $0x158] sm:$0xff] }
 0x18a   : > { %v1396_v45 = vsel %vm1394_vm12, %v1391_v28, %v1393_v44  ;;  %3724 = vmatpush1.bf16.msra.mxu0 %v3723_v42  ;;  %v2143_v42 = vld [vmem:[%s5084_s23 + $0x38] sm:$0xff]  ;;  %v1912_v44 = vld [vmem:[%s4313_s4 + $0x40] sm:$0xff]  ;;  %v1938_v26 = vld [vmem:[%s4313_s4 + $0x110] sm:$0xff] }
 0x18b   : > { %v1795_v47 = vpop.permute.xlu0 %1794  ;;  %3470 = vmatprep.subr.msk.mxu0 %vm1397_vm13, %v1396_v45  ;;  %v3817_v43 = vpack.c.bf16 %v2143_v42, %v2142_v41  ;;  %v1914_v45 = vld [vmem:[%s4313_s4 + $0x50] sm:$0xff]  ;;  %v1944_v41 = vld [vmem:[%s4313_s4 + $0x140] sm:$0xff] }
 0x18c   : > { %v1942_v36 = vld [vmem:[%s4313_s4 + $0x130] sm:$0xff] }
 0x18d   : > { %v1790_v49 = vpop.permute.xlu1 %1789  ;;  %v3781_v40 = vpack.c.bf16 %v1942_v36, %v1940_v35  ;;  %v1946_v42 = vld [vmem:[%s4313_s4 + $0x150] sm:$0xff]  ;;  %v2630_v35 = vld [vmem:[%s5086_s0] sm:$0xff]  ;;  %v2631_v36 = vld [vmem:[%s5086_s0 + $0x8] sm:$0xff] }
 0x18e   : > { %v1824_v51 = vsel %vm1397_vm13, %v1714_v48, %v1790_v49  ;;  %v1825_v52 = vsel %vm1400_vm14, %v1790_v49, %v1795_v47  ;;  %3471 = vmatpush1.msk.msra.mxu0 %vm1397_vm13, %v1395_v46  ;;  %v3753_v46 = vpack.c.bf16 %v1914_v45, %v1912_v44  ;;  %v1919_v48 = vld [vmem:[%s4313_s4 + $0x78] sm:$0xff]  ;;  %v1916_v49 = vld [vmem:[%s4313_s4 + $0x60] sm:$0xff]  ;;  %v3785_v45 = vpack.c.bf16 %v1946_v42, %v1944_v41 }
 0x18f   : > { %v3735_v54 = vpack.c.bf16 %v1825_v52, %v1824_v51  ;;  %3472 = vmatmul.mubr.msk.f32.vlgmr.msra.gmra.mrb[0].mxu0 %vm1417_vm0, %v4655_v39  ;;  %3734 = vmatprep.subr.bf16.mxu0 %v4199_v2  ;;  %v1804_v53 = vpop.permute.xlu0 %1803  ;;  %v1918_v52 = vld [vmem:[%s4313_s4 + $0x70] sm:$0xff]  ;;  %v1951_v44 = vld [vmem:[%s4313_s4 + $0x178] sm:$0xff] }
 0x190   : > { %3625 = vmatprep.mubr.msk.f32.mxu0 %vm4206_vm3, %v4204_v20 }
 0x191   : > { %3736 = vmatpush3.bf16.msra.mxu0 %v3735_v54  ;;  %v1800_v14 = vpop.permute.xlu1 %1799  ;;  %v1921_v54 = vld [vmem:[%s4313_s4 + $0x88] sm:$0xff] }
 0x192   : > { %3737 = vmatprep.subr.bf16.mxu0 %v4199_v2  ;;  %v1826_v50 = vsel %vm1403_vm15, %v1795_v47, %v1800_v14  ;;  %v1917_v47 = vld [vmem:[%s4313_s4 + $0x68] sm:$0xff]  ;;  %v1923_v14 = vld [vmem:[%s4313_s4 + $0x98] sm:$0xff] }
 0x193   : > { %v1814_v58 = vpop.permute.xlu0 %1813  ;;  %v3755_v51 = vpack.c.bf16 %v1919_v48, %v1917_v47  ;;  %v1948_v47 = vld [vmem:[%s4313_s4 + $0x160] sm:$0xff]  ;;  %v1950_v48 = vld [vmem:[%s4313_s4 + $0x170] sm:$0xff] }
 0x195   : > { %v1809_v55 = vpop.permute.xlu1 %1808 }
 0x196   : > { %v1827_v56 = vsel %vm1397_vm13, %v1804_v53, %v1809_v55  ;;  %v1828_v60 = vsel %vm1400_vm14, %v1809_v55, %v1814_v58  ;;  %v3759_v53 = vpack.c.bf16 %v1923_v14, %v1921_v54  ;;  %v1920_v55 = vld [vmem:[%s4313_s4 + $0x80] sm:$0xff] }
 0x197   : > { %v3738_v57 = vpack.c.bf16 %v1827_v56, %v1826_v50  ;;  %v3757_v50 = vpack.c.bf16 %v1918_v52, %v1916_v49  ;;  %v1922_v56 = vld [vmem:[%s4313_s4 + $0x90] sm:$0xff]  ;;  %v1953_v49 = vld [vmem:[%s4313_s4 + $0x188] sm:$0xff]  ;;  %v3789_v52 = vpack.c.bf16 %v1950_v48, %v1948_v47  ;;  %v1952_v14 = vld [vmem:[%s4313_s4 + $0x180] sm:$0xff] }
 0x199   : > { %3739 = vmatpush3.bf16.msra.mxu0 %v3738_v57  ;;  %v1925_v57 = vld [vmem:[%s4313_s4 + $0xa8] sm:$0xff] }
 0x19a   : > { %3740 = vmatprep.subr.bf16.mxu0 %v4199_v2 }
 0x1d0   : > { %v1819_v59 = vpop.permute.xlu1 %1818 }
 0x1d1   : > { %v1829_v29 = vsel %vm1403_vm15, %v1814_v58, %v1819_v59  ;;  %v1927_v58 = vld [vmem:[%s4313_s4 + $0xb8] sm:$0xff]  ;;  %v3761_v59 = vpack.c.bf16 %v1922_v56, %v1920_v55 }
 0x1d2   : > { %v3741_v61 = vpack.c.bf16 %v1829_v29, %v1828_v60  ;;  %v3763_v29 = vpack.c.bf16 %v1927_v58, %v1925_v57  ;;  %v1959_v55 = vld [vmem:[%s4313_s4 + $0x1b8] sm:$0xff]  ;;  %v1956_v58 = vld [vmem:[%s4313_s4 + $0x1a0] sm:$0xff] }
 0x1d4   : > { %3742 = vmatpush3.bf16.msra.mxu0 %v3741_v61  ;;  %v1924_v61 = vld [vmem:[%s4313_s4 + $0xa0] sm:$0xff] }
 0x1d5   : > { %3623 = vmatprep.subr.mxu0 %v4204_v20 }
 0x1d6   : > { %v1823_v62 = vpop.permute.xlu0 %1822 }
 0x1d8   : > { %3624 = vmatpush3.msk.msra.mxu0 %vm1397_vm13, %v1823_v62  ;;  %v1926_v62 = vld [vmem:[%s4313_s4 + $0xb0] sm:$0xff] }
 0x1d9   : > { %3626 = vmatmul.mubr.msk.f32.vlgmr.msra.gmra.mrb[2].mxu0 %vm1417_vm0, %v4655_v39  ;;  %3633 = vmatprep.subr.mxu0 %v4204_v20  ;;  %vm2055_vm0 = vcmask 523264  }
 0x1da   : > { %3635 = vmatprep.mubr.msk.f32.mxu0 %vm4206_vm3, %v4204_v20 }
 0x1e1   : > { %v1415_v32 = vpop.permute.xlu1 %1414 }
 0x239   : > { %v1695_v0 = vpop.f32.mrb[0].mxu1 }
 0x23a   : > { %v4711_v1 = vadd.f32 %v1695_v0, %v1415_v32  ;;  %v3610_v24 = vpop.f32.mrb[1].mxu1 }
 0x23b   : > { %v1931_v24 = vld [vmem:[%s4313_s4 + $0xd8] sm:$0xff] }
 0x23c   : > { %3629 = vmatpush3.msk.msra.mxu1 %vm1403_vm15, %v4711_v1 }
 0x23d   : > { %3631 = vmatmul.mubr.msk.f32.vlgmr.msra.gmra.mrb[2].mxu1 %vm1130_vm5, %v1902_v3  ;;  %3744 = vmatprep.subr.bf16.mxu1 %v3743_v10  ;;  %v1929_v3 = vld [vmem:[%s4313_s4 + $0xc8] sm:$0xff]  ;;  %v1930_v10 = vld [vmem:[%s4313_s4 + $0xd0] sm:$0xff] }
 0x23e   : > { %3746 = vmatpush1.bf16.msra.mxu1 %v3745_v13  ;;  %v3767_v8 = vpack.c.bf16 %v1931_v24, %v1929_v3  ;;  %v3769_v13 = vpack.c.bf16 %v1930_v10, %v1928_v9  ;;  %v1960_v3 = vld [vmem:[%s4313_s4 + $0x1c0] sm:$0xff]  ;;  %v1962_v24 = vld [vmem:[%s4313_s4 + $0x1d0] sm:$0xff] }
 0x23f   : > { %3748 = vmatprep.subr.bf16.mxu1 %v3747_v15  ;;  %v3771_v15 = vpack.c.bf16 %v1935_v12, %v1933_v11  ;;  %v1964_v9 = vld [vmem:[%s4313_s4 + $0x1e0] sm:$0xff]  ;;  %v1966_v10 = vld [vmem:[%s4313_s4 + $0x1f0] sm:$0xff] }
 0x240   : > { %v3805_v11 = vpack.c.bf16 %v1966_v10, %v1964_v9  ;;  %v2646_v12 = vld [vmem:[%s5086_s0 + $0x80] sm:$0xff]  ;;  %v2657_v9 = vld [vmem:[%s5086_s0 + $0xd8] sm:$0xff] }
 0x242   : > { %3750 = vmatpush1.bf16.msra.mxu1 %v3749_v22  ;;  %v3773_v22 = vpack.c.bf16 %v1934_v18, %v1932_v16 }
 0x243   : > { %3752 = vmatprep.subr.bf16.mxu1 %v3751_v23  ;;  %v3775_v23 = vpack.c.bf16 %v1939_v21, %v1937_v19 }
 0x246   : > { %3754 = vmatpush1.bf16.msra.mxu1 %v3753_v46 }
 0x247   : > { %3756 = vmatprep.subr.bf16.mxu1 %v3755_v51  ;;  %v1955_v51 = vld [vmem:[%s4313_s4 + $0x198] sm:$0xff] }
 0x248   : > { %v3791_v54 = vpack.c.bf16 %v1955_v51, %v1953_v49  ;;  %v2632_v51 = vld [vmem:[%s5086_s0 + $0x10] sm:$0xff] }
 0x24a   : > { %3758 = vmatpush1.bf16.msra.mxu1 %v3757_v50  ;;  %v1954_v50 = vld [vmem:[%s4313_s4 + $0x190] sm:$0xff] }
 0x24b   : > { %3760 = vmatprep.subr.bf16.mxu1 %v3759_v53  ;;  %v1957_v53 = vld [vmem:[%s4313_s4 + $0x1a8] sm:$0xff]  ;;  %v3793_v56 = vpack.c.bf16 %v1954_v50, %v1952_v14  ;;  %v2650_v14 = vld [vmem:[%s5086_s0 + $0xa0] sm:$0xff] }
 0x24c   : > { %v3795_v57 = vpack.c.bf16 %v1959_v55, %v1957_v53  ;;  %v2651_v50 = vld [vmem:[%s5086_s0 + $0xa8] sm:$0xff] }
 0x24d   : > { %v3891_v55 = vpack.c.bf16 %v2651_v50, %v2650_v14  ;;  %v2325_v14 = vld [vmem:[#allocation2 + $0x28] sm:$0xff]  ;;  %v2327_v50 = vld [vmem:[#allocation2 + $0x38] sm:$0xff] }
 0x24e   : > { %3762 = vmatpush1.bf16.msra.mxu1 %v3761_v59  ;;  %v1958_v59 = vld [vmem:[%s4313_s4 + $0x1b0] sm:$0xff] }
 0x24f   : > { %3764 = vmatprep.subr.bf16.mxu1 %v3763_v29  ;;  %v1961_v29 = vld [vmem:[%s4313_s4 + $0x1c8] sm:$0xff] }
 0x262   : > { %v1491_v39 = vpop.f32.mrb[0].mxu0 }
 0x263   : > { %v4717_v4 = vadd.f32 %v1491_v39, %v1415_v32  ;;  %v1493_v5 = vpop.f32.mrb[1].mxu0 }
 0x264   : > { %v4719_v25 = vadd.f32 %v1493_v5, %v1415_v32 }
 0x265   : > { %2665 = vrot.lane.b32.xlu1 %v4717_v4, %s4200_s18 }
 0x266   : > { %v4061_v30 = vpack.i.bf16 %v4204_v20, %v4719_v25 }
 0x268   : > { %4062 = vrot.lane.b32.xlu0 %v4061_v30, %s4200_s18  ;;  %v3765_v30 = vpack.c.bf16 %v1926_v62, %v1924_v61  ;;  %v1963_v61 = vld [vmem:[%s4313_s4 + $0x1d8] sm:$0xff]  ;;  %v3797_v62 = vpack.c.bf16 %v1958_v59, %v1956_v58  ;;  %v2652_v58 = vld [vmem:[%s5086_s0 + $0xb0] sm:$0xff] }
 0x269   : > { %v2653_v59 = vld [vmem:[%s5086_s0 + $0xb8] sm:$0xff] }
 0x26a   : > { %3766 = vmatpush1.bf16.msra.mxu1 %v3765_v30  ;;  %v1967_v30 = vld [vmem:[%s4313_s4 + $0x1f8] sm:$0xff] }
 0x26b   : > { %3768 = vmatprep.subr.bf16.mxu1 %v3767_v8 }
 0x26e   : > { %3770 = vmatpush1.bf16.msra.mxu1 %v3769_v13 }
 0x26f   : > { %3772 = vmatprep.subr.bf16.mxu1 %v3771_v15 }
 0x272   : > { %3774 = vmatpush1.bf16.msra.mxu1 %v3773_v22 }
 0x273   : > { %3776 = vmatprep.subr.bf16.mxu1 %v3775_v23 }
 0x2ac   : > { %v1898_v63 = vpop.f32.mrb[2].mxu0 }
 0x2ad   : > { %v4738_v27 = vadd.f32 %v1898_v63, %v1415_v32  ;;  %v3627_v28 = vpop.f32.mrb[3].mxu0  ;;  %v1941_v63 = vld [vmem:[%s4313_s4 + $0x128] sm:$0xff] }
 0x2ae   : > { %v1943_v28 = vld [vmem:[%s4313_s4 + $0x138] sm:$0xff] }
 0x2af   : > { %3634 = vmatpush3.msk.msra.mxu0 %vm1403_vm15, %v4738_v27 }
 0x2b0   : > { %3636 = vmatmul.mubr.msk.f32.vlgmr.msra.gmra.mrb[4].mxu0 %vm1130_vm5, %v2134_v33  ;;  %3807 = vmatprep.subr.bf16.mxu0 %v4199_v2  ;;  %v3777_v33 = vpack.c.bf16 %v1938_v26, %v1936_v17 }
 0x2b1   : > { %3809 = vmatpush3.bf16.msra.mxu0 %v3808_v34  ;;  %3654 = vmatprep.mubr.msk.f32.mxu0 %vm4206_vm3, %v4204_v20  ;;  %v3779_v34 = vpack.c.bf16 %v1943_v28, %v1941_v63 }
 0x2b2   : > { %3810 = vmatprep.subr.bf16.mxu0 %v4199_v2  ;;  %3778 = vmatpush1.bf16.msra.mxu1 %v3777_v33 }
 0x2b3   : > { %3780 = vmatprep.subr.bf16.mxu1 %v3779_v34 }
 0x2b5   : > { %3812 = vmatpush3.bf16.msra.mxu0 %v3811_v37  ;;  %v1945_v37 = vld [vmem:[%s4313_s4 + $0x148] sm:$0xff] }
 0x2b6   : > { %3813 = vmatprep.subr.bf16.mxu0 %v4199_v2  ;;  %3782 = vmatpush1.bf16.msra.mxu1 %v3781_v40  ;;  %v2648_v40 = vld [vmem:[%s5086_s0 + $0x90] sm:$0xff] }
 0x2b9   : > { %3815 = vmatpush3.bf16.msra.mxu0 %v3814_v31  ;;  %v3783_v31 = vpack.c.bf16 %v1947_v38, %v1945_v37 }
 0x2ba   : > { %3816 = vmatprep.subr.bf16.mxu0 %v4199_v2 }
 0x2bb   : > { %3784 = vmatprep.subr.bf16.mxu1 %v3783_v31  ;;  %v2649_v31 = vld [vmem:[%s5086_s0 + $0x98] sm:$0xff] }
 0x2bc   : > { %3786 = vmatpush1.bf16.msra.mxu1 %v3785_v45  ;;  %v4855_v45 = vsel %vm2055_vm0, %v4711_v1, 0.0  ;;  %v3887_v49 = vpack.c.bf16 %v2649_v31, %v2648_v40 }
 0x2bd   : > { %3818 = vmatpush3.bf16.msra.mxu0 %v3817_v43  ;;  %v1949_v43 = vld [vmem:[%s4313_s4 + $0x168] sm:$0xff] }
 0x2be   : > { %3657 = vmatprep.subr.msk.mxu0 %vm1403_vm15, %v4738_v27  ;;  %v3787_v46 = vpack.c.bf16 %v1951_v44, %v1949_v43 }
 0x2c0   : > { %3788 = vmatprep.subr.bf16.mxu1 %v3787_v46  ;;  %v3885_v46 = vpack.c.bf16 %v2631_v36, %v2630_v35 }
 0x2c1   : > { %3790 = vmatpush1.bf16.msra.mxu1 %v3789_v52  ;;  %v2633_v52 = vld [vmem:[%s5086_s0 + $0x18] sm:$0xff] }
 0x2c2   : > { %3792 = vmatprep.subr.bf16.mxu1 %v3791_v54  ;;  %v3889_v53 = vpack.c.bf16 %v2633_v52, %v2632_v51  ;;  %v2320_v51 = vld [vmem:[#allocation2] sm:$0xff] }
 0x2c5   : > { %3794 = vmatpush1.bf16.msra.mxu1 %v3793_v56  ;;  %v2634_v56 = vld [vmem:[%s5086_s0 + $0x20] sm:$0xff] }
 0x2c6   : > { %3796 = vmatprep.subr.bf16.mxu1 %v3795_v57  ;;  %v2635_v57 = vld [vmem:[%s5086_s0 + $0x28] sm:$0xff] }
 0x2c9   : > { %3798 = vmatpush1.bf16.msra.mxu1 %v3797_v62  ;;  %v2637_v62 = vld [vmem:[%s5086_s0 + $0x38] sm:$0xff] }
 0x2d7   : > { %v2666_v21 = vpop.permute.xlu1 %2665 }
 0x2da   : > { %v4770_v60 = vpop.permute.xlu0 %4062 }
 0x2db   : > { %v4065_v32 = vunpack.i.h.bf16 %v4770_v60  ;;  %v4064_v0 = vunpack.i.l.bf16 %v4770_v60 }
 0x2dd   : > { %v2678_v39 = vmax.f32 %v4065_v32, 0.0  ;;  %v2672_v5 = vsel %vm1281_vm1, %v4064_v0, %v4065_v32  ;;  %v3799_v32 = vpack.c.bf16 %v1963_v61, %v1961_v29  ;;  %v2671_v23 = vsel %vm1281_vm1, %v2666_v21, %v4064_v0  ;;  %v2636_v61 = vld [vmem:[%s5086_s0 + $0x30] sm:$0xff]  ;;  %v2643_v21 = vld [vmem:[%s5086_s0 + $0x68] sm:$0xff] }
 0x2de   : > { %v4782_v6 = vmax.f32 %v4719_v25, %v2672_v5  ;;  %v1965_v5 = vld [vmem:[%s4313_s4 + $0x1e8] sm:$0xff]  ;;  %v4831_v17 = vmax.f32 %v4717_v4, %v2671_v23  ;;  %v3895_v29 = vpack.c.bf16 %v2653_v59, %v2652_v58  ;;  %v2661_v23 = vld [vmem:[%s5086_s0 + $0xf8] sm:$0xff]  ;;  %vm2235_vm1 = vcmask 392192  }
 0x2df   : > { %3800 = vmatprep.subr.bf16.mxu1 %v3799_v32  ;;  %v3803_v8 = vpack.c.bf16 %v1967_v30, %v1965_v5  ;;  %v2654_v32 = vld [vmem:[%s5086_s0 + $0xc0] sm:$0xff]  ;;  %v2639_v30 = vld [vmem:[%s5086_s0 + $0x48] sm:$0xff]  ;;  %v2331_v59 = vld [vmem:[#allocation2 + $0x58] sm:$0xff] }
 0x2e0   : > { %v4071_v7 = vpack.i.bf16 %v2678_v39, %v4782_v6  ;;  %v3801_v39 = vpack.c.bf16 %v1962_v24, %v1960_v3  ;;  %v2655_v3 = vld [vmem:[%s5086_s0 + $0xc8] sm:$0xff]  ;;  %v3897_v24 = vpack.c.bf16 %v2637_v62, %v2636_v61  ;;  %v2638_v5 = vld [vmem:[%s5086_s0 + $0x40] sm:$0xff] }
 0x2e1   : > { %v3901_v10 = vpack.c.bf16 %v2639_v30, %v2638_v5  ;;  %v2329_v58 = vld [vmem:[#allocation2 + $0x48] sm:$0xff]  ;;  %v2335_v30 = vld [vmem:[#allocation2 + $0x78] sm:$0xff] }
 0x2e2   : > { %4072 = vrot.lane.b32.xlu1 %v4071_v7, %s5059_s2  ;;  %3802 = vmatpush1.bf16.msra.mxu1 %v3801_v39  ;;  %v2647_v7 = vld [vmem:[%s5086_s0 + $0x88] sm:$0xff]  ;;  %v3899_v39 = vpack.c.bf16 %v2655_v3, %v2654_v32  ;;  %v3827_v62 = vpack.c.bf16 %v2331_v59, %v2329_v58  ;;  %v2328_v32 = vld [vmem:[#allocation2 + $0x40] sm:$0xff]  ;;  %v2330_v3 = vld [vmem:[#allocation2 + $0x50] sm:$0xff] }
 0x2e3   : > { %3804 = vmatprep.subr.bf16.mxu1 %v3803_v8  ;;  %v3883_v13 = vpack.c.bf16 %v2647_v7, %v2646_v12  ;;  %v2656_v8 = vld [vmem:[%s5086_s0 + $0xd0] sm:$0xff]  ;;  %v2641_v7 = vld [vmem:[%s5086_s0 + $0x58] sm:$0xff]  ;;  %v2333_v5 = vld [vmem:[#allocation2 + $0x68] sm:$0xff] }
 0x2e4   : > { %v2640_v12 = vld [vmem:[%s5086_s0 + $0x50] sm:$0xff] }
 0x2e6   : > { %3806 = vmatpush1.bf16.msra.mxu1 %v3805_v11  ;;  %v3903_v11 = vpack.c.bf16 %v2657_v9, %v2656_v8 }
 0x2e7   : > { %3884 = vmatprep.subr.bf16.mxu1 %v3883_v13  ;;  %v2658_v13 = vld [vmem:[%s5086_s0 + $0xe0] sm:$0xff] }
 0x310   : > { %v2040_v15 = vpop.f32.mrb[2].mxu1 }
 0x311   : > { %v2045_v16 = vrot.slane %v2040_v15, 2  ;;  %v2051_v18 = vrot.slane %v2040_v15, 6  ;;  %v3632_v19 = vpop.f32.mrb[3].mxu1  ;;  %v2049_v37 = vrot.slane %v2040_v15, 4 }
 0x312   : > { %v2642_v19 = vld [vmem:[%s5086_s0 + $0x60] sm:$0xff] }
 0x313   : > { %v4066_v22 = vpack.i.bf16 %v2045_v16, %v2051_v18  ;;  %v3905_v16 = vpack.c.bf16 %v2641_v7, %v2640_v12  ;;  %v2332_v12 = vld [vmem:[#allocation2 + $0x60] sm:$0xff]  ;;  %v2334_v7 = vld [vmem:[#allocation2 + $0x70] sm:$0xff] }
 0x315   : > { %4067 = vrot.lane.b32.xlu0 %v4066_v22, %s4217_s1  ;;  %v2660_v22 = vld [vmem:[%s5086_s0 + $0xf0] sm:$0xff] }
 0x319   : > { %2682 = vrot.lane.b32.xlu0 %v4831_v17, %s5059_s2  ;;  %s4219_s2 = smov 80  }
 0x354   : > { %v4835_v26 = vpop.permute.xlu1 %4072 }
 0x355   : > { %v4075_v60 = vunpack.i.h.bf16 %v4835_v26  ;;  %v4074_v0 = vunpack.i.l.bf16 %v4835_v26 }
 0x357   : > { %v2689_v44 = vsel %vm1315_vm4, %v4074_v0, %v4075_v60  ;;  %v3909_v60 = vpack.c.bf16 %v2643_v21, %v2642_v19  ;;  %v2338_v19 = vld [vmem:[#allocation2 + $0x90] sm:$0xff]  ;;  %v2341_v21 = vld [vmem:[#allocation2 + $0xa8] sm:$0xff] }
 0x358   : > { %v2693_v54 = vmax.f32 %v4782_v6, %v2689_v44  ;;  %v3893_v6 = vpack.c.bf16 %v2635_v57, %v2634_v56  ;;  %v2317_v44 = vld [vmem:[%s5089_s26 + $0x10] sm:$0xff]  ;;  %v2324_v56 = vld [vmem:[#allocation2 + $0x20] sm:$0xff] }
 0x359   : > { %v2326_v57 = vld [vmem:[#allocation2 + $0x30] sm:$0xff] }
 0x383   : > { %v4837_v63 = vpop.f32.mrb[4].mxu0 }
 0x384   : > { %v3637_v28 = vpop.f32.mrb[5].mxu0  ;;  %v2221_v33 = vrot.slane %v4837_v63, 2  ;;  %v2225_v34 = vrot.slane %v4837_v63, 4  ;;  %v2229_v43 = vrot.slane %v4837_v63, 6 }
 0x385   : > { %v3911_v28 = vpack.c.bf16 %v2661_v23, %v2660_v22  ;;  %v2343_v22 = vld [vmem:[#allocation2 + $0xb8] sm:$0xff] }
 0x386   : > { %2222 = vrot.lane.b32.xlu1 %v2221_v33, %s5087_s10  ;;  %2226 = vrot.lane.b32.xlu0 %v2225_v34, %s5088_s28  ;;  %v2644_v33 = vld [vmem:[%s5086_s0 + $0x70] sm:$0xff]  ;;  %v2645_v34 = vld [vmem:[%s5086_s0 + $0x78] sm:$0xff] }
 0x387   : > { %v4068_v38 = vpop.permute.xlu0 %4067  ;;  %v3913_v36 = vpack.c.bf16 %v2645_v34, %v2644_v33  ;;  %v2342_v33 = vld [vmem:[#allocation2 + $0xb0] sm:$0xff]  ;;  %v2345_v34 = vld [vmem:[#allocation2 + $0xc8] sm:$0xff] }
 0x388   : > { %v4070_v41 = vunpack.i.h.bf16 %v4068_v38  ;;  %v4069_v42 = vunpack.i.l.bf16 %v4068_v38 }
 0x38a   : > { %2230 = vrot.lane.b32.xlu1 %v2229_v43, %s4218_s11  ;;  %2858 = vrot.lane.b32.xlu0 %v4855_v45, %s4200_s18  ;;  %v2057_v47 = vsel %vm2055_vm0, %v2049_v37, %v4069_v42  ;;  %v2056_v48 = vsel %vm2055_vm0, %v2040_v15, %v4070_v41  ;;  %v2659_v15 = vld [vmem:[%s5086_s0 + $0xe8] sm:$0xff]  ;;  %v2315_v42 = vld [vmem:[%s5089_s26] sm:$0xff]  ;;  %s5094_s0 = smov 96  }
 0x38b   : > { %2127 = vmatprep.mubr.f32.mxu1 %v2057_v47  ;;  %v3907_v18 = vpack.c.bf16 %v2659_v15, %v2658_v13  ;;  %v2683_v35 = vpop.permute.xlu0 %2682  ;;  %v2316_v43 = vld [vmem:[%s5089_s26 + $0x8] sm:$0xff]  ;;  %v3833_v15 = vpack.c.bf16 %v2334_v7, %v2332_v12  ;;  %v2368_v12 = vld [vmem:[#allocation2 + $0x180] sm:$0xff]  ;;  %v2370_v7 = vld [vmem:[#allocation2 + $0x190] sm:$0xff] }
 0x38c   : > { %2128 = vmatmul.mubr.f32.vlgmr.msra.gmra.mrb[4].mxu1 %v2056_v48  ;;  %v2688_v37 = vsel %vm1315_vm4, %v2683_v35, %v4074_v0  ;;  %v2321_v48 = vld [vmem:[#allocation2 + $0x8] sm:$0xff]  ;;  %v2347_v35 = vld [vmem:[#allocation2 + $0xd8] sm:$0xff] }
 0x38d   : > { %3886 = vmatpush3.bf16.msra.mxu1 %v3885_v46  ;;  %2758 = vmatprep.mubr.f32.mxu1 %v2693_v54  ;;  %v2692_v38 = vmax.f32 %v4831_v17, %v2688_v37  ;;  %v2322_v54 = vld [vmem:[#allocation2 + $0x10] sm:$0xff]  ;;  %v2337_v13 = vld [vmem:[#allocation2 + $0x88] sm:$0xff]  ;;  %v3843_v37 = vpack.c.bf16 %v2347_v35, %v2345_v34  ;;  %v2379_v34 = vld [vmem:[#allocation2 + $0x1d8] sm:$0xff] }
 0x38e   : > { %3888 = vmatprep.subr.bf16.mxu1 %v3887_v49  ;;  %v2323_v49 = vld [vmem:[#allocation2 + $0x18] sm:$0xff] }
 0x38f   : > { %v3819_v52 = vpack.c.bf16 %v2323_v49, %v2321_v48  ;;  %v2352_v49 = vld [vmem:[#allocation2 + $0x100] sm:$0xff] }
 0x391   : > { %3890 = vmatpush3.bf16.msra.mxu1 %v3889_v53  ;;  %v3821_v53 = vpack.c.bf16 %v2322_v54, %v2320_v51  ;;  %v2354_v51 = vld [vmem:[#allocation2 + $0x110] sm:$0xff]  ;;  %v2359_v54 = vld [vmem:[#allocation2 + $0x138] sm:$0xff] }
 0x392   : > { %3892 = vmatprep.subr.bf16.mxu1 %v3891_v55  ;;  %v3823_v55 = vpack.c.bf16 %v2327_v50, %v2325_v14  ;;  %v3853_v14 = vpack.c.bf16 %v2354_v51, %v2352_v49 }
 0x395   : > { %3894 = vmatpush3.bf16.msra.mxu1 %v3893_v6 }
 0x396   : > { %3896 = vmatprep.subr.bf16.mxu1 %v3895_v29  ;;  %v3825_v29 = vpack.c.bf16 %v2326_v57, %v2324_v56  ;;  %v2361_v56 = vld [vmem:[#allocation2 + $0x148] sm:$0xff]  ;;  %v2363_v57 = vld [vmem:[#allocation2 + $0x158] sm:$0xff] }
 0x397   : > { %v3859_v59 = vpack.c.bf16 %v2363_v57, %v2361_v56 }
 0x399   : > { %3898 = vmatpush3.bf16.msra.mxu1 %v3897_v24  ;;  %v3048_v24 = vrot.slane %v4711_v1, 6  ;;  %v2339_v1 = vld [vmem:[#allocation2 + $0x98] sm:$0xff] }
 0x39a   : > { %3900 = vmatprep.subr.bf16.mxu1 %v3899_v39 }
 0x39d   : > { %3902 = vmatpush3.bf16.msra.mxu1 %v3901_v10  ;;  %v3829_v10 = vpack.c.bf16 %v2330_v3, %v2328_v32 }
 0x39e   : > { %3904 = vmatprep.subr.bf16.mxu1 %v3903_v11  ;;  %v3831_v11 = vpack.c.bf16 %v2335_v30, %v2333_v5  ;;  %v2369_v5 = vld [vmem:[#allocation2 + $0x188] sm:$0xff]  ;;  %v2371_v30 = vld [vmem:[#allocation2 + $0x198] sm:$0xff] }
 0x3a1   : > { %3906 = vmatpush3.bf16.msra.mxu1 %v3905_v16  ;;  %v3835_v16 = vpack.c.bf16 %v2339_v1, %v2337_v13  ;;  %v3869_v1 = vpack.c.bf16 %v2370_v7, %v2368_v12 }
 0x3a2   : > { %3908 = vmatprep.subr.bf16.mxu1 %v3907_v18  ;;  %v2336_v18 = vld [vmem:[#allocation2 + $0x80] sm:$0xff] }
 0x3a3   : > { %v3837_v23 = vpack.c.bf16 %v2338_v19, %v2336_v18  ;;  %v2375_v18 = vld [vmem:[#allocation2 + $0x1b8] sm:$0xff] }
 0x3a5   : > { %3910 = vmatpush3.bf16.msra.mxu1 %v3909_v60  ;;  %v3839_v60 = vpack.c.bf16 %v2343_v22, %v2341_v21  ;;  %v2372_v21 = vld [vmem:[#allocation2 + $0x1a0] sm:$0xff]  ;;  %v2374_v22 = vld [vmem:[#allocation2 + $0x1b0] sm:$0xff] }
 0x3a6   : > { %3912 = vmatprep.subr.bf16.mxu1 %v3911_v28  ;;  %v2340_v28 = vld [vmem:[#allocation2 + $0xa0] sm:$0xff] }
 0x3a9   : > { %3914 = vmatpush3.bf16.msra.mxu1 %v3913_v36  ;;  %v3841_v36 = vpack.c.bf16 %v2342_v33, %v2340_v28  ;;  %v2377_v33 = vld [vmem:[#allocation2 + $0x1c8] sm:$0xff] }
 0x3aa   : > { %3915 = vmatprep.subr.bf16.mxu1 %v4199_v2 }
 0x3ac   : > { %2759 = vmatmul.mubr.f32.vlgmr.msra.gmra.mrb[6].mxu1 %v2692_v38  ;;  %v2344_v38 = vld [vmem:[#allocation2 + $0xc0] sm:$0xff] }
 0x3ad   : > { %3681 = vmatprep.mubr.msk.f32.mxu1 %vm4206_vm3, %v4204_v20 }
 0x3f8   : > { %v2223_v40 = vpop.permute.xlu1 %2222  ;;  %v2227_v31 = vpop.permute.xlu0 %2226 }
 0x3f9   : > { %v2233_v41 = vsel %vm1152_vm6, %v4837_v63, %v2223_v40  ;;  %v2318_v63 = vld [vmem:[%s5089_s26 + $0x18] sm:$0xff]  ;;  %v2346_v40 = vld [vmem:[#allocation2 + $0xd0] sm:$0xff] }
 0x3fa   : > { %v2234_v26 = vsel %vm1217_vm8, %v2233_v41, %v2227_v31  ;;  %v2349_v31 = vld [vmem:[#allocation2 + $0xe8] sm:$0xff]  ;;  %v2351_v41 = vld [vmem:[#allocation2 + $0xf8] sm:$0xff] }
 0x3fc   : > { %v2231_v0 = vpop.permute.xlu1 %2230  ;;  %v2859_v7 = vpop.permute.xlu0 %2858 }
 0x3fd   : > { %v2236_v17 = vsel %vm2235_vm1, %v2234_v26, %v2231_v0  ;;  %v3845_v26 = vpack.c.bf16 %v2346_v40, %v2344_v38  ;;  %v3847_v0 = vpack.c.bf16 %v2351_v41, %v2349_v31  ;;  %v2376_v38 = vld [vmem:[#allocation2 + $0x1c0] sm:$0xff]  ;;  %v2378_v40 = vld [vmem:[#allocation2 + $0x1d0] sm:$0xff] }
 0x3fe   : > { %3655 = vmatmul.mubr.msk.f32.vlgmr.msra.gmra.mrb[6].mxu0 %vm2055_vm0, %v2236_v17  ;;  %v2350_v17 = vld [vmem:[#allocation2 + $0xf0] sm:$0xff] }
 0x3ff   : > { %3658 = vmatpush3.msk.msra.mxu0 %vm1403_vm15, %v4738_v27  ;;  %3659 = vmatprep.mubr.msk.f32.mxu0 %vm1130_vm5, %v2315_v42  ;;  %v2348_v42 = vld [vmem:[#allocation2 + $0xe0] sm:$0xff] }
 0x400   : > { %3820 = vmatprep.subr.bf16.mxu0 %v3819_v52  ;;  %v2357_v52 = vld [vmem:[#allocation2 + $0x128] sm:$0xff] }
 0x401   : > { %v3855_v50 = vpack.c.bf16 %v2359_v54, %v2357_v52 }
 0x402   : > { %3660 = vmatmul.mubr.msk.f32.vlgmr.msra.gmra.mrb[8].mxu0 %vm1130_vm5, %v2316_v43  ;;  %v2353_v43 = vld [vmem:[#allocation2 + $0x108] sm:$0xff] }
 0x403   : > { %3662 = vmatprep.mubr.msk.f32.mxu0 %vm1130_vm5, %v2317_v44  ;;  %3822 = vmatpush1.bf16.msra.mxu0 %v3821_v53  ;;  %v2355_v44 = vld [vmem:[#allocation2 + $0x118] sm:$0xff]  ;;  %v2356_v53 = vld [vmem:[#allocation2 + $0x120] sm:$0xff] }
 0x404   : > { %3824 = vmatprep.subr.bf16.mxu0 %v3823_v55  ;;  %v3851_v48 = vpack.c.bf16 %v2355_v44, %v2353_v43  ;;  %v2358_v55 = vld [vmem:[#allocation2 + $0x130] sm:$0xff] }
 0x405   : > { %v3857_v58 = vpack.c.bf16 %v2358_v55, %v2356_v53 }
 0x406   : > { %3663 = vmatmul.mubr.msk.f32.gmra.mrb[10].mxu0 %vm1130_vm5, %v2318_v63  ;;  %v3849_v63 = vpack.c.bf16 %v2350_v17, %v2348_v42  ;;  %v3877_v42 = vpack.c.bf16 %v2378_v40, %v2376_v38  ;;  %vm2543_vm5 = vcmask 654336  }
 0x407   : > { %3826 = vmatpush1.bf16.msra.mxu0 %v3825_v29  ;;  %v2362_v29 = vld [vmem:[#allocation2 + $0x150] sm:$0xff] }
 0x408   : > { %3828 = vmatprep.subr.bf16.mxu0 %v3827_v62  ;;  %v2367_v62 = vld [vmem:[#allocation2 + $0x178] sm:$0xff] }
 0x40b   : > { %3830 = vmatpush1.bf16.msra.mxu0 %v3829_v10 }
 0x40c   : > { %3832 = vmatprep.subr.bf16.mxu0 %v3831_v11  ;;  %v3867_v11 = vpack.c.bf16 %v2371_v30, %v2369_v5 }
 0x40f   : > { %3834 = vmatpush1.bf16.msra.mxu0 %v3833_v15 }
 0x410   : > { %3836 = vmatprep.subr.bf16.mxu0 %v3835_v16  ;;  %v2373_v16 = vld [vmem:[#allocation2 + $0x1a8] sm:$0xff] }
 0x411   : > { %v3871_v19 = vpack.c.bf16 %v2375_v18, %v2373_v16  ;;  %v4962_v16 = vmax.f32 %v4855_v45, %v2859_v7 }
 0x413   : > { %3838 = vmatpush1.bf16.msra.mxu0 %v3837_v23 }
 0x414   : > { %3840 = vmatprep.subr.bf16.mxu0 %v3839_v60  ;;  %v3873_v60 = vpack.c.bf16 %v2374_v22, %v2372_v21  ;;  %v2941_v22 = vld [vmem:[%s5093_s16] sm:$0x3f]  ;;  %s5100_s16 = sld [smem:[#allocation14_spill]] }
 0x417   : > { %3842 = vmatpush1.bf16.msra.mxu0 %v3841_v36 }
 0x418   : > { %3844 = vmatprep.subr.bf16.mxu0 %v3843_v37  ;;  %v3875_v37 = vpack.c.bf16 %v2379_v34, %v2377_v33 }
 0x41b   : > { %3846 = vmatpush1.bf16.msra.mxu0 %v3845_v26 }
 0x41c   : > { %3848 = vmatprep.subr.bf16.mxu0 %v3847_v0 }
 0x41f   : > { %3850 = vmatpush1.bf16.msra.mxu0 %v3849_v63 }
 0x420   : > { %3852 = vmatprep.subr.bf16.mxu0 %v3851_v48 }
 0x423   : > { %3854 = vmatpush1.bf16.msra.mxu0 %v3853_v14  ;;  %v2381_v14 = vld [vmem:[#allocation2 + $0x1e8] sm:$0xff] }
 0x424   : > { %3856 = vmatprep.subr.bf16.mxu0 %v3855_v50  ;;  %v2383_v50 = vld [vmem:[#allocation2 + $0x1f8] sm:$0xff] }
 0x425   : > { %v3879_v57 = vpack.c.bf16 %v2383_v50, %v2381_v14 }
 0x427   : > { %3858 = vmatpush1.bf16.msra.mxu0 %v3857_v58  ;;  %v2380_v58 = vld [vmem:[#allocation2 + $0x1e0] sm:$0xff] }
 0x428   : > { %3860 = vmatprep.subr.bf16.mxu0 %v3859_v59  ;;  %v2382_v59 = vld [vmem:[#allocation2 + $0x1f0] sm:$0xff] }
 0x45f   : > { %v4911_v46 = vpop.f32.mrb[4].mxu1 }
 0x460   : > { %v4913_v47 = vpop.f32.mrb[5].mxu1 }
 0x47f   : > { %v3569_v6 = vpop.f32.mrb[6].mxu1 }
 0x480   : > { %v3570_v61 = vpop.f32.mrb[7].mxu1 }
 0x481   : > { %v3571_v39 = vadd.f32 %v3570_v61, %v3569_v6  ;;  %v2360_v6 = vld [vmem:[#allocation2 + $0x140] sm:$0xff]  ;;  %v2365_v61 = vld [vmem:[#allocation2 + $0x168] sm:$0xff] }
 0x482   : > { %v3861_v32 = vpack.c.bf16 %v2362_v29, %v2360_v6  ;;  %v3863_v3 = vpack.c.bf16 %v2367_v62, %v2365_v61 }
 0x483   : > { %v4917_v8 = vsel %vm1403_vm15, %v3571_v39, %v3048_v24  ;;  %v4920_v9 = vsel %vm2055_vm0, %v3571_v39, 0.0  ;;  %v2364_v24 = vld [vmem:[#allocation2 + $0x160] sm:$0xff]  ;;  %v2366_v39 = vld [vmem:[#allocation2 + $0x170] sm:$0xff] }
 0x484   : > { %2774 = vrot.lane.b32.xlu1 %v4920_v9, %s4200_s18  ;;  %3862 = vmatpush1.bf16.msra.mxu0 %v3861_v32  ;;  %v3865_v10 = vpack.c.bf16 %v2366_v39, %v2364_v24  ;;  %s5090_s18 = sld [smem:[#allocation13_spill]]  ;;  %v3881_v32 = vpack.c.bf16 %v2382_v59, %v2380_v58 }
 0x485   : > { %3864 = vmatprep.subr.bf16.mxu0 %v3863_v3 }
 0x488   : > { %3866 = vmatpush1.bf16.msra.mxu0 %v3865_v10 }
 0x489   : > { %3868 = vmatprep.subr.bf16.mxu0 %v3867_v11 }
 0x48a   : > { %v2764_v6 = vld [vmem:[%s5090_s18] sm:$0xff]  ;;  %v2765_v3 = vld [vmem:[%s5090_s18 + $0x8] sm:$0xff]  ;;  %v2766_v39 = vld [vmem:[%s5090_s18 + $0x10] sm:$0xff] }
 0x48b   : > { %v4938_v24 = vpack.c.bf16 %v2765_v3, %v2764_v6  ;;  %v2767_v5 = vld [vmem:[%s5090_s18 + $0x18] sm:$0xff]  ;;  %v2768_v10 = vld [vmem:[%s5090_s18 + $0x20] sm:$0xff]  ;;  %v2769_v11 = vld [vmem:[%s5090_s18 + $0x28] sm:$0xff] }
 0x48c   : > { %3870 = vmatpush1.bf16.msra.mxu0 %v3869_v1  ;;  %v4947_v30 = vpack.c.bf16 %v2767_v5, %v2766_v39  ;;  %v4955_v12 = vpack.c.bf16 %v2769_v11, %v2768_v10  ;;  %v2770_v1 = vld [vmem:[%s5090_s18 + $0x30] sm:$0xff] }
 0x48d   : > { %3872 = vmatprep.subr.bf16.mxu0 %v3871_v19  ;;  %3917 = vmatpush3.bf16.msra.mxu1 %v4938_v24 }
 0x48e   : > { %3918 = vmatprep.subr.bf16.mxu1 %v4199_v2 }
 0x490   : > { %3874 = vmatpush1.bf16.msra.mxu0 %v3873_v60  ;;  %v3139_v60 = vld [vmem:[%s4363_s12] sm:$0x3f] }
 0x491   : > { %3876 = vmatprep.subr.bf16.mxu0 %v3875_v37  ;;  %3920 = vmatpush3.bf16.msra.mxu1 %v4947_v30 }
 0x492   : > { %3921 = vmatprep.subr.bf16.mxu1 %v4199_v2 }
 0x494   : > { %3878 = vmatpush1.bf16.msra.mxu0 %v3877_v42 }
 0x495   : > { %3880 = vmatprep.subr.bf16.mxu0 %v3879_v57  ;;  %3923 = vmatpush3.bf16.msra.mxu1 %v4955_v12 }
 0x496   : > { %3924 = vmatprep.subr.bf16.mxu1 %v4199_v2 }
 0x498   : > { %3882 = vmatpush1.bf16.msra.mxu0 %v3881_v32 }
 0x499   : > { %3927 = vmatprep.subr.bf16.mxu0 %v4199_v2 }
 0x4d1   : > { %v4924_v13 = vpop.f32.mrb[6].mxu0 }
 0x4d2   : > { %v3656_v15 = vpop.f32.mrb[7].mxu0 }
 0x4d3   : > { %v2771_v15 = vld [vmem:[%s5090_s18 + $0x38] sm:$0xff] }
 0x4d4   : > { %v4965_v18 = vpack.c.bf16 %v2771_v15, %v2770_v1 }
 0x4d5   : > { %v3661_v23 = vpop.f32.mrb[8].mxu0 }
 0x4d6   : > { %v4926_v28 = vpop.f32.mrb[9].mxu0  ;;  %v2498_v35 = vrot.slane %v3661_v23, 2  ;;  %v2502_v36 = vrot.slane %v3661_v23, 4  ;;  %v2506_v31 = vrot.slane %v3661_v23, 6  ;;  %3926 = vmatpush3.bf16.msra.mxu1 %v4965_v18 }
 0x4d7   : > { %v2482_v41 = vrot.slane %v4926_v28, 2  ;;  %v2486_v26 = vrot.slane %v4926_v28, 4  ;;  %v2490_v49 = vrot.slane %v4926_v28, 6 }
 0x4d9   : > { %v3664_v0 = vpop.f32.mrb[10].mxu0 }
 0x4da   : > { %v2527_v17 = vrot.slane %v3664_v0, 2  ;;  %v2531_v43 = vrot.slane %v3664_v0, 4  ;;  %v2535_v44 = vrot.slane %v3664_v0, 6  ;;  %v4930_v63 = vpop.f32.mrb[11].mxu0  ;;  %v4091_v48 = vpack.i.bf16 %v3661_v23, %v3664_v0 }
 0x4db   : > { %v2511_v51 = vrot.slane %v4930_v63, 2  ;;  %v2515_v52 = vrot.slane %v4930_v63, 4  ;;  %v2519_v54 = vrot.slane %v4930_v63, 6 }
 0x4dc   : > { %v4096_v53 = vpack.i.bf16 %v2498_v35, %v2527_v17  ;;  %v4101_v55 = vpack.i.bf16 %v2502_v36, %v2531_v43  ;;  %v4106_v56 = vpack.i.bf16 %v2506_v31, %v2535_v44 }
 0x4dd   : > { %v4076_v29 = vpack.i.bf16 %v2482_v41, %v2511_v51  ;;  %v4081_v61 = vpack.i.bf16 %v2486_v26, %v2515_v52  ;;  %v4086_v62 = vpack.i.bf16 %v2490_v49, %v2519_v54 }
 0x4df   : > { %4077 = vrot.lane.b32.xlu0 %v4076_v29, %s5087_s10  ;;  %4082 = vrot.lane.b32.xlu1 %v4081_v61, %s5088_s28  ;;  %s5091_s10 = sld [smem:[#allocation6_spill]]  ;;  %s5092_s28 = sld [smem:[#allocation8_spill]] }
 0x4e3   : > { %4087 = vrot.lane.b32.xlu0 %v4086_v62, %s4218_s11  ;;  %4092 = vrot.lane.b32.xlu1 %v4091_v48, %s4217_s1  ;;  %s5095_s1 = sld [smem:[#allocation10_spill]]  ;;  %s5096_s11 = smov 112  }
 0x4e5   : > { %v1903_v19 = vld [vmem:[%s5091_s10] sm:$0x3]  ;;  %s1050_s10 = scalar_lea.vmem %s4373_s20, %s4419_s7 }
 0x4e6   : > { %v2135_v21 = vld [vmem:[%s5092_s28] sm:$0x3]  ;;  %s1046_s28 = scalar_lea.vmem %s4368_s27, %s4448_s22 }
 0x4e7   : > { %4097 = vrot.lane.b32.xlu0 %v4096_v53, %s4219_s2  ;;  %4102 = vrot.lane.b32.xlu1 %v4101_v55, %s5094_s0  ;;  %s5098_s2 = sld [smem:[#allocation18_spill]]  ;;  %s5101_s0 = sld [smem:[#allocation16_spill]] }
 0x4e9   : > { %v2319_v33 = vld [vmem:[%s5095_s1] sm:$0x3]  ;;  %s1054_s1 = scalar_lea.vmem %s4378_s6, %s4419_s7 }
 0x4eb   : > { %4107 = vrot.lane.b32.xlu0 %v4106_v56, %s5096_s11  ;;  %2863 = vrot.lane.b32.xlu1 %v4962_v16, %s5097_s3 }
 0x4ed   : > { %v3047_v34 = vld [vmem:[%s5098_s2] sm:$0x3f] }
 0x4ef   : > { %2060 = vperm.xlu1 %4060, %v1903_v19  }
 0x4f3   : > { %2239 = vperm.xlu1 %4060, %v2135_v21  }
 0x4f6   : > { %v2775_v45 = vpop.permute.xlu1 %2774 }
 0x4f7   : > { %v2777_v23 = vmax.f32 %v4920_v9, %v2775_v45  ;;  %2960 = vperm.xlu1 %4060, %v2941_v22  }
 0x4f9   : > { %2779 = vrot.lane.b32.xlu0 %v2777_v23, %s5097_s3  ;;  %s5099_s3 = sld [smem:[#allocation15_spill]] }
 0x4fb   : > { %3149 = vperm.xlu1 %4060, %v3139_v60  }
 0x4fd   : > { %2556 = vperm.xlu0 %4111, %v2319_v33  }
 0x501   : > { %3057 = vperm.xlu0 %4111, %v3047_v34  }
 0x551   : > { %v4078_v35 = vpop.permute.xlu0 %4077  ;;  %v4083_v36 = vpop.permute.xlu1 %4082 }
 0x552   : > { %v4080_v37 = vunpack.i.h.bf16 %v4078_v35  ;;  %v4079_v38 = vunpack.i.l.bf16 %v4078_v35  ;;  %v4085_v40 = vunpack.i.h.bf16 %v4083_v36  ;;  %v4084_v31 = vunpack.i.l.bf16 %v4083_v36  ;;  %v2940_v35 = vld [vmem:[%s5100_s16] sm:$0x3f] }
 0x554   : > { %v2539_v41 = vsel %vm1152_vm6, %v4926_v28, %v4080_v37  ;;  %v2547_v9 = vsel %vm1152_vm6, %v4930_v63, %v4079_v38  ;;  %vm2963_vm6 = vcmask 48128  }
 0x555   : > { %v4088_v26 = vpop.permute.xlu0 %4087  ;;  %v4093_v0 = vpop.permute.xlu1 %4092  ;;  %v2540_v43 = vsel %vm1217_vm8, %v2539_v41, %v4085_v40  ;;  %v2548_v44 = vsel %vm1217_vm8, %v2547_v9, %v4084_v31  ;;  %v3143_v40 = vrot.slane %v4738_v27, 4  ;;  %v3138_v41 = vld [vmem:[%s5101_s0] sm:$0x3f]  ;;  %vm3228_vm8 = vcmask 128000  }
 0x556   : > { %v4090_v42 = vunpack.i.h.bf16 %v4088_v26  ;;  %v4089_v17 = vunpack.i.l.bf16 %v4088_v26  ;;  %v4095_v48 = vunpack.i.h.bf16 %v4093_v0  ;;  %v4094_v49 = vunpack.i.l.bf16 %v4093_v0 }
 0x558   : > { %v2541_v51 = vsel %vm2235_vm1, %v2540_v43, %v4090_v42  ;;  %v2549_v52 = vsel %vm2235_vm1, %v2548_v44, %v4089_v17 }
 0x559   : > { %v4098_v54 = vpop.permute.xlu0 %4097  ;;  %v4103_v28 = vpop.permute.xlu1 %4102  ;;  %v2542_v63 = vsel %vm2055_vm0, %v2541_v51, %v4095_v48  ;;  %v2550_v53 = vsel %vm2055_vm0, %v2549_v52, %v4094_v49 }
 0x55a   : > { %v4100_v14 = vunpack.i.h.bf16 %v4098_v54  ;;  %v4099_v50 = vunpack.i.l.bf16 %v4098_v54  ;;  %v4105_v55 = vunpack.i.h.bf16 %v4103_v28  ;;  %v4104_v56 = vunpack.i.l.bf16 %v4103_v28 }
 0x55c   : > { %v2544_v57 = vsel %vm2543_vm5, %v2542_v63, %v4100_v14  ;;  %v2551_v58 = vsel %vm2543_vm5, %v2550_v53, %v4099_v50 }
 0x55d   : > { %v4108_v59 = vpop.permute.xlu0 %4107  ;;  %v2545_v61 = vsel %vm1363_vm10, %v2544_v57, %v4105_v55  ;;  %v2552_v62 = vsel %vm1363_vm10, %v2551_v58, %v4104_v56  ;;  %v2864_v39 = vpop.permute.xlu1 %2863 }
 0x55e   : > { %v4110_v6 = vunpack.i.h.bf16 %v4108_v59  ;;  %v4109_v29 = vunpack.i.l.bf16 %v4108_v59 }
 0x560   : > { %v2553_v32 = vsel %vm1315_vm4, %v2552_v62, %v4109_v29  ;;  %v2546_v3 = vsel %vm1315_vm4, %v2545_v61, %v4110_v6 }
 0x561   : > { %2623 = vmatprep.mubr.f32.mxu0 %v2553_v32 }
 0x562   : > { %2624 = vmatmul.mubr.f32.vlgmr.msra.gmra.mrb[12].mxu0 %v2546_v3 }
 0x563   : > { %3929 = vmatpush3.bf16.msra.mxu0 %v4938_v24  ;;  %3700 = vmatprep.mubr.msk.f32.mxu0 %vm4206_vm3, %v4204_v20 }
 0x564   : > { %3930 = vmatprep.subr.bf16.mxu0 %v4199_v2 }
 0x567   : > { %3932 = vmatpush3.bf16.msra.mxu0 %v4947_v30  ;;  %v2866_v30 = vmax.f32 %v4962_v16, %v2864_v39 }
 0x568   : > { %3933 = vmatprep.subr.bf16.mxu0 %v4199_v2 }
 0x56b   : > { %v2780_v5 = vpop.permute.xlu0 %2779  ;;  %3935 = vmatpush3.bf16.msra.mxu0 %v4955_v12 }
 0x56c   : > { %v2782_v10 = vmax.f32 %v2777_v23, %v2780_v5  ;;  %3936 = vmatprep.subr.bf16.mxu0 %v4199_v2 }
 0x56e   : > { %3682 = vmatmul.mubr.msk.f32.vlgmr.msra.gmra.mrb[8].mxu1 %vm2055_vm0, %v2782_v10  ;;  %v2061_v24 = vpop.permute.xlu1 %2060 }
 0x56f   : > { %v2130_v11 = vadd.f32 %v4911_v46, %v2061_v24  ;;  %v2132_v7 = vadd.f32 %v4913_v47, %v2061_v24  ;;  %3938 = vmatpush3.bf16.msra.mxu0 %v4965_v18  ;;  %3037 = vmatprep.mubr.f32.mxu1 %v4204_v20  ;;  %v3046_v46 = vld [vmem:[%s5099_s3] sm:$0x3f] }
 0x570   : > { %3703 = vmatprep.subr.mxu0 %v4204_v20 }
 0x571   : > { %v2944_v16 = vrot.slane %v2130_v11, 6  ;;  %v2945_v19 = vrot.slane %v2132_v7, 6 }
 0x572   : > { %3701 = vmatmul.mubr.msk.f32.vlgmr.msra.gmra.mrb[14].mxu0 %vm2055_vm0, %v2866_v30  ;;  %v2240_v12 = vpop.permute.xlu1 %2239 }
 0x573   : > { %v2312_v2 = vadd.f32 %v4924_v13, %v2240_v12  ;;  %3705 = vmatprep.mubr.msk.f32.mxu0 %vm4206_vm3, %v4204_v20  ;;  %v2954_v23 = vsel %vm1403_vm15, %v4717_v4, %v2944_v16 }
 0x575   : > { %v3051_v1 = vrot.slane %v2312_v2, 4 }
 0x576   : > { %v2961_v17 = vpop.permute.xlu1 %2960 }
 0x577   : > { %v3054_v47 = vsel %vm1400_vm14, %v4917_v8, %v3051_v1  ;;  %v2955_v8 = vsel %vm1403_vm15, %v4719_v25, %v2945_v19 }
 0x578   : > { %3704 = vmatpush3.msk.msra.mxu0 %vm1397_vm13, %v3054_v47 }
 0x579   : > { %3706 = vmatmul.mubr.msk.f32.vlgmr.msra.gmra.mrb[16].mxu0 %vm2963_vm6, %v3046_v46 }
 0x57a   : > { %v3150_v49 = vpop.permute.xlu1 %3149 }
 0x57c   : > { %v2557_v15 = vpop.permute.xlu0 %2556 }
 0x580   : > { %v3058_v26 = vpop.permute.xlu0 %3057 }
 0x635   : > { %v2625_v18 = vpop.f32.mrb[12].mxu0 }
 0x636   : > { %v2626_v21 = vadd.f32 %v2625_v18, %v2557_v15  ;;  %v2627_v13 = vpop.f32.mrb[13].mxu0 }
 0x637   : > { %v2628_v22 = vadd.f32 %v2627_v13, %v2557_v15 }
 0x638   : > { %v2950_v45 = vrot.slane %v2626_v21, 4 }
 0x639   : > { %v2951_v60 = vrot.slane %v2628_v22, 4 }
 0x63a   : > { %v2956_v33 = vsel %vm1400_vm14, %v2954_v23, %v2950_v45 }
 0x63b   : > { %v2957_v34 = vsel %vm1400_vm14, %v2955_v8, %v2951_v60 }
 0x63c   : > { %3491 = vmatprep.subr.msk.mxu1 %vm1397_vm13, %v2957_v34 }
 0x63d   : > { %3492 = vmatpush1.msk.msra.mxu1 %vm1397_vm13, %v2956_v33 }
 0x63e   : > { %3493 = vmatmul.mubr.msk.f32.vlgmr.msra.gmra.mrb[10].mxu1 %vm2963_vm6, %v2940_v35  ;;  %3708 = vmatprep.subr.mxu1 %v4204_v20 }
 0x63f   : > { %3710 = vmatprep.mubr.msk.f32.mxu1 %vm4206_vm3, %v4204_v20  ;;  %vm3136_vm3 = vcmask 521216  }
 0x641   : > { %v2852_v4 = vpop.f32.mrb[8].mxu1 }
 0x642   : > { %v3683_v36 = vpop.f32.mrb[9].mxu1 }
 0x645   : > { %v2936_v37 = vpop.f32.mrb[14].mxu0 }
 0x646   : > { %v3141_v25 = vrot.slane %v2936_v37, 6  ;;  %v3702_v38 = vpop.f32.mrb[15].mxu0 }
 0x648   : > { %v3145_v31 = vsel %vm1403_vm15, %v2852_v4, %v3141_v25 }
 0x649   : > { %v3146_v9 = vsel %vm1400_vm14, %v3145_v31, %v3143_v40 }
 0x64a   : > { %3709 = vmatpush3.msk.msra.mxu1 %vm1397_vm13, %v3146_v9 }
 0x64b   : > { %3711 = vmatmul.mubr.msk.f32.vlgmr.msra.gmra.mrb[12].mxu1 %vm2963_vm6, %v3138_v41 }
 0x64c   : > { %v3132_v20 = vpop.f32.mrb[16].mxu0 }
 0x64d   : > { %v3133_v0 = vadd.f32 %v3132_v20, %v3058_v26  ;;  %v3707_v42 = vpop.f32.mrb[17].mxu0 }
 0x64f   : > { %3137 = vst.msk [vmem:[%s1050_s10] sm:$0x3f] %vm3136_vm3, %v3133_v0 }
 0x711   : > { %v3039_v27 = vpop.f32.mrb[10].mxu1 }
 0x712   : > { %v3040_v43 = vadd.f32 %v3039_v27, %v2961_v17  ;;  %v3041_v44 = vpop.f32.mrb[11].mxu1 }
 0x713   : > { %v3042_v48 = vadd.f32 %v3041_v44, %v2961_v17 }
 0x714   : > { %3044 = vst [vmem:[%s1046_s28] sm:$0x3f] %v3040_v43 }
 0x715   : > { %3045 = vst [vmem:[%s1046_s28 + $0x8] sm:$0x3f] %v3042_v48 }
 0x71e   : > { %v3224_v51 = vpop.f32.mrb[12].mxu1 }
 0x71f   : > { %v3225_v52 = vadd.f32 %v3224_v51, %v3150_v49  ;;  %v3712_v54 = vpop.f32.mrb[13].mxu1 }
 0x721   : > { %3229 = vst.msk [vmem:[%s1054_s1] sm:$0x3f] %vm3228_vm8, %v3225_v52 }
 0x722 PF: > { %s73_s15 = sadd.s32 1, %s4150_s15  }
 0x723   : > { %p70_p3 = scmp.ge.s32.totalorder %s73_s15, 4  }
 0x725   :  { %72 = sbr.rel (!%p70_p3) target bundleno = 49 (0x31), region = 236 }
 0x72c   :  { %3279 = vsyncpa [#allocation3], 1 }
 0x72d   :  { %3281 = vsyncpa [#allocation3 + $0x1], 1 }

</bundles_post_ra>
